<compile_context>
chip_gen: v5e
topology: v5e:2x2
jax: 0.10.0
libtpu: 0.0.40
codegen_flags: <defaults>
</compile_context>

<pallas_src>
import functools
import math

import jax
import jax.numpy as jnp
from jax import lax
from jax.experimental import pallas as pl
from jax.experimental.pallas import tpu as pltpu

# ----------------------------------------------------------------------------
# Vocab sizes derived from the original script's word lists
# ----------------------------------------------------------------------------
intransitive_verbs = ['runs', 'sleeps', 'laughs', 'cries', 'talks', 'jumps', 'dances', 'sings']
female_names = ['Alice', 'Emma', 'Olivia', 'Ava', 'Isabella', 'Sophia', 'Mia', 'Charlotte',
                'Amelia', 'Harper', 'Evelyn', 'Abigail', 'Emily', 'Elizabeth', 'Mila']
male_names = ['Bob', 'John', 'Noah', 'Oliver', 'Elijah', 'William', 'James', 'Benjamin',
              'Lucas', 'Henry', 'Michael']
names = female_names + male_names
special_vocab = ['<PAD>', '<SOS>', '<UNK>', '<EOS>']
transitive_verbs = ['eats', 'sees', 'hugs', 'paints', 'kicks', 'throws', 'compliments']
eng_vocab = special_vocab + sorted(list(set(intransitive_verbs + transitive_verbs + names
                                            + ['himself', 'herself'])))
parsed_vocab = special_vocab + sorted(list(set([w.upper() for w in
                                                intransitive_verbs + transitive_verbs + names])))

ENG_V = len(eng_vocab)        # 47  (encoder input vocab)
PARSED_V = len(parsed_vocab)  # 45  (decoder / output vocab)
D = 32                        # d_model
FF = 4 * D                    # dim_feedforward
CTX = 8                       # ctx_length
EPS = 1e-5                    # LayerNorm eps (PyTorch default)
VPAD = 128                    # lane-dense padding for vocab dims (two-hot K and logits N)
NEG = -1e30                   # finite "minus infinity" for attention masks

# combined embedding-table row offsets (all fit in 128 rows: 47 + 45 + 8 + 8 = 108)
POS_ENC_OFF = ENG_V + PARSED_V           # 92
POS_DEC_OFF = POS_ENC_OFF + CTX          # 100

# --- slab A (32, 768): column offsets of the (D, out) weights -----------------
A_E_SA_IN, A_E_SA_OUT, A_E_FF1 = 0, 96, 128
A_D_SA_IN, A_D_SA_OUT = 256, 352
A_D_CA_IN, A_D_CA_OUT = 384, 480
A_D_FF1, A_OUT = 512, 640
SLAB_A_COLS = 768

# --- slab B (128, 96): column offsets ----------------------------------------
SB_E_FF2, SB_D_FF2, SB_EMB = 0, 32, 64
SLAB_B_COLS = 96

# --- slab C (25, 128): bias rows 0..10, norm (weight,bias) pairs rows 11..24 --
(BI_E_SA_IN, BI_E_SA_OUT, BI_E_FF1, BI_E_FF2,
 BI_D_SA_IN, BI_D_SA_OUT, BI_D_CA_IN, BI_D_CA_OUT,
 BI_D_FF1, BI_D_FF2, BI_OUT) = range(11)
NORM_ROW0 = 11
(N_E1, N_E2, N_EF, N_D1, N_D2, N_D3, N_DF) = range(7)


# ----------------------------------------------------------------------------
# Pallas kernel: embeddings + encoder + decoder + output projection, fused
# ----------------------------------------------------------------------------
def ed_transformer_kernel(twohot_ref, masks_ref, slab_a_ref, slab_b_ref, slab_c_ref,
                          logits_ref, *, nsrc, ntgt):
    C = slab_c_ref[...]                       # (25, 128) biases + norms

    def bias_row(i, w):                       # (1, w)
        return C[i:i + 1, :w]

    def norm_wb(i):                           # ((1, D), (1, D))
        r = NORM_ROW0 + 2 * i
        return C[r:r + 1, :D], C[r + 1:r + 2, :D]

    # ---- fused token + positional embedding: one "two-hot" matmul -----------
    emb = jnp.dot(twohot_ref[...], slab_b_ref[:, SB_EMB:SB_EMB + D],
                  preferred_element_type=jnp.float32)       # (nsrc+ntgt, D)
    src = emb[:nsrc, :]
    tgt = emb[nsrc:, :]

    # ---- precomputed additive masks (block-diagonal over batch, causal dec) -
    enc_mask = masks_ref[0:nsrc, 0:nsrc]
    dec_mask = masks_ref[0:ntgt, nsrc:nsrc + ntgt]
    crs_mask = masks_ref[0:ntgt, nsrc + ntgt:nsrc + ntgt + nsrc]

    # ---- building blocks -----------------------------------------------------
    def softmax(s):
        mx = jnp.max(s, axis=-1, keepdims=True)
        p = jnp.exp(s - mx)
        # approx reciprocal runs on the EUP slot; ~2^-12 rel. error vs exact divide.
        return p * pl.reciprocal(jnp.sum(p, axis=-1, keepdims=True), approx=True)

    def attn_core(q, k, v, mask, wo_col, bo_row):
        s = lax.dot_general(q, k, (((1,), (1,)), ((), ())),
                            preferred_element_type=jnp.float32) + mask
        a = jnp.dot(softmax(s), v, preferred_element_type=jnp.float32)
        wo = slab_a_ref[:, wo_col:wo_col + D]
        return jnp.dot(a, wo, preferred_element_type=jnp.float32) + bias_row(bo_row, D)

    def self_attn(x, w_col, bi_row, wo_col, bo_row, mask):
        # single fused QKV matmul (Q weights/bias pre-scaled by 1/sqrt(D) at pack time)
        w_in = slab_a_ref[:, w_col:w_col + 3 * D]
        qkv = jnp.dot(x, w_in, preferred_element_type=jnp.float32) + bias_row(bi_row, 3 * D)
        return attn_core(qkv[:, :D], qkv[:, D:2 * D], qkv[:, 2 * D:], mask, wo_col, bo_row)

    def cross_attn(y, mem, w_col, bi_row, wo_col, bo_row, mask):
        b_in = bias_row(bi_row, 3 * D)
        wq = slab_a_ref[:, w_col:w_col + D]
        wkv = slab_a_ref[:, w_col + D:w_col + 3 * D]
        q = jnp.dot(y, wq, preferred_element_type=jnp.float32) + b_in[:, :D]
        kv = jnp.dot(mem, wkv, preferred_element_type=jnp.float32) + b_in[:, D:]
        return attn_core(q, kv[:, :D], kv[:, D:], mask, wo_col, bo_row)

    def ffn(x, w1_col, b1_row, w2_col, b2_row):
        w1 = slab_a_ref[:, w1_col:w1_col + FF]
        w2 = slab_b_ref[:, w2_col:w2_col + D]
        h = jnp.maximum(jnp.dot(x, w1, preferred_element_type=jnp.float32)
                        + bias_row(b1_row, FF), 0.0)
        return jnp.dot(h, w2, preferred_element_type=jnp.float32) + bias_row(b2_row, D)

    def ln(x, idx):
        nw, nb = norm_wb(idx)
        mu = jnp.mean(x, axis=-1, keepdims=True)
        xc = x - mu
        var = jnp.mean(xc * xc, axis=-1, keepdims=True)
        return xc * lax.rsqrt(var + EPS) * nw + nb

    # ---- encoder layer (post-norm) + encoder final LayerNorm -> memory ------
    x = src
    sa = self_attn(x, A_E_SA_IN, BI_E_SA_IN, A_E_SA_OUT, BI_E_SA_OUT, enc_mask)
    x = ln(x + sa, N_E1)
    ff = ffn(x, A_E_FF1, BI_E_FF1, SB_E_FF2, BI_E_FF2)
    x = ln(x + ff, N_E2)
    memory = ln(x, N_EF)

    # ---- decoder layer (post-norm) + decoder final LayerNorm ----------------
    y = tgt
    sa = self_attn(y, A_D_SA_IN, BI_D_SA_IN, A_D_SA_OUT, BI_D_SA_OUT, dec_mask)
    y = ln(y + sa, N_D1)
    ca = cross_attn(y, memory, A_D_CA_IN, BI_D_CA_IN, A_D_CA_OUT, BI_D_CA_OUT, crs_mask)
    y = ln(y + ca, N_D2)
    ff = ffn(y, A_D_FF1, BI_D_FF1, SB_D_FF2, BI_D_FF2)
    y = ln(y + ff, N_D3)
    y = ln(y, N_DF)

    # ---- output projection (lane-dense: vocab padded to 128) ----------------
    logits_ref[...] = (jnp.dot(y, slab_a_ref[:, A_OUT:A_OUT + VPAD],
                               preferred_element_type=jnp.float32)
                       + bias_row(BI_OUT, VPAD))


# ----------------------------------------------------------------------------
# Parameters (deterministic, in-script), PyTorch-layout raw -> packed slabs
# ----------------------------------------------------------------------------
RAW_SPECS = [
    ('e_sa_in_w', (3 * D, D)), ('e_sa_in_b', (3 * D,)),
    ('e_sa_out_w', (D, D)), ('e_sa_out_b', (D,)),
    ('e_ff1_w', (FF, D)), ('e_ff1_b', (FF,)),
    ('e_ff2_w', (D, FF)), ('e_ff2_b', (D,)),
    ('d_sa_in_w', (3 * D, D)), ('d_sa_in_b', (3 * D,)),
    ('d_sa_out_w', (D, D)), ('d_sa_out_b', (D,)),
    ('d_ca_in_w', (3 * D, D)), ('d_ca_in_b', (3 * D,)),
    ('d_ca_out_w', (D, D)), ('d_ca_out_b', (D,)),
    ('d_ff1_w', (FF, D)), ('d_ff1_b', (FF,)),
    ('d_ff2_w', (D, FF)), ('d_ff2_b', (D,)),
    ('out_w', (PARSED_V, D)), ('out_b', (PARSED_V,)),
]
NORM_NAMES = ['e_n1', 'e_n2', 'e_nf', 'd_n1', 'd_n2', 'd_n3', 'd_nf']
BIAS_NAMES = ['e_sa_in_b', 'e_sa_out_b', 'e_ff1_b', 'e_ff2_b',
              'd_sa_in_b', 'd_sa_out_b', 'd_ca_in_b', 'd_ca_out_b',
              'd_ff1_b', 'd_ff2_b', 'out_b']
QSCALED_BIASES = ('e_sa_in_b', 'd_sa_in_b', 'd_ca_in_b')


def make_params(key):
    raw = {}
    keys = jax.random.split(key, len(RAW_SPECS))
    for k, (name, shape) in zip(keys, RAW_SPECS):
        scale = 0.02 if name.endswith('_b') else 0.1
        raw[name] = (scale * jax.random.normal(k, shape)).astype(jnp.float32)
    for n in NORM_NAMES:
        raw[n + '_w'] = jnp.ones((D,), jnp.float32)
        raw[n + '_b'] = jnp.zeros((D,), jnp.float32)
    return raw


def make_embeddings(key):
    k1, k2, k3, k4 = jax.random.split(key, 4)
    enc_emb = (0.1 * jax.random.normal(k1, (ENG_V, D))).astype(jnp.float32)
    dec_emb = (0.1 * jax.random.normal(k2, (PARSED_V, D))).astype(jnp.float32)
    enc_pos = (0.1 * jax.random.normal(k3, (CTX, D))).astype(jnp.float32)
    dec_pos = (0.1 * jax.random.normal(k4, (CTX, D))).astype(jnp.float32)
    # manipulate_embeddings() analog from the original script
    enc_emb = enc_emb.at[:, -1].set(0.0)
    dec_emb = dec_emb.at[:, -1].set(0.0)
    for word in ('himself', 'herself'):
        idx = eng_vocab.index(word)
        enc_emb = enc_emb.at[idx, :].set(0.0).at[idx, -1].set(1.0)
    return enc_emb, dec_emb, enc_pos, dec_pos


def _pad_lanes(x, width=VPAD):
    return jnp.pad(x, ((0, 0), (0, width - x.shape[1])))


def pack_params(raw, embeddings):
    """One-time host-side packing: transpose to (in,out), fold Q scale, build 3 slabs."""
    enc_emb, dec_emb, enc_pos, dec_pos = embeddings
    inv = jnp.float32(1.0 / math.sqrt(D))

    def t(name):                              # PyTorch (out,in) -> (in,out)
        return jnp.transpose(raw[name])

    def scaled_in(name):                      # fold 1/sqrt(D) into the Q columns
        w = t(name)
        return jnp.concatenate([w[:, :D] * inv, w[:, D:]], axis=1)

    # slab A: all (D, out) weights, lane-concatenated -> (32, 768)
    slab_a = jnp.concatenate([
        scaled_in('e_sa_in_w'), t('e_sa_out_w'), t('e_ff1_w'),
        scaled_in('d_sa_in_w'), t('d_sa_out_w'),
        scaled_in('d_ca_in_w'), t('d_ca_out_w'), t('d_ff1_w'),
        _pad_lanes(t('out_w')),
    ], axis=1)
    assert slab_a.shape == (D, SLAB_A_COLS)

    # combined embedding + positional table: (128, 32)
    emb_table = jnp.zeros((VPAD, D), jnp.float32)
    emb_table = emb_table.at[:ENG_V].set(enc_emb)
    emb_table = emb_table.at[ENG_V:ENG_V + PARSED_V].set(dec_emb)
    emb_table = emb_table.at[POS_ENC_OFF:POS_ENC_OFF + CTX].set(enc_pos)
    emb_table = emb_table.at[POS_DEC_OFF:POS_DEC_OFF + CTX].set(dec_pos)

    # slab B: (128, out) tensors -> (128, 96)
    slab_b = jnp.concatenate([t('e_ff2_w'), t('d_ff2_w'), emb_table], axis=1)
    assert slab_b.shape == (FF, SLAB_B_COLS)

    # slab C: 11 bias rows + 14 norm rows, padded to 128 lanes -> (25, 128)
    rows = []
    for n in BIAS_NAMES:
        b = raw[n]
        if n in QSCALED_BIASES:
            b = jnp.concatenate([b[:D] * inv, b[D:]])
        rows.append(_pad_lanes(b.reshape(1, -1)))
    for n in NORM_NAMES:
        rows.append(_pad_lanes(raw[n + '_w'].reshape(1, -1)))
        rows.append(_pad_lanes(raw[n + '_b'].reshape(1, -1)))
    slab_c = jnp.concatenate(rows, axis=0)
    assert slab_c.shape == (11 + 2 * len(NORM_NAMES), VPAD)

    return {'slab_a': slab_a, 'slab_b': slab_b, 'slab_c': slab_c}


# ----------------------------------------------------------------------------
# Wrapper: single pallas_call, no grid; masks & two-hot selectors built outside
# ----------------------------------------------------------------------------
@jax.jit
def ed_transformer_forward(src_tokens, tgt_tokens, packed):
    """src_tokens: (S, B) int32, tgt_tokens: (T, B) int32 -> (T, B, PARSED_V) f32."""
    S, B = src_tokens.shape
    T, _ = tgt_tokens.shape
    assert S <= CTX and T <= CTX  # positions beyond CTX would hit zero table rows
    nsrc, ntgt = S * B, T * B

    # "two-hot" selector rows: one hit at the combined-vocab index, one at the
    # positional row.  Seq-major flatten (row = s*B + b) so the kernel output
    # reshapes straight back to PyTorch's (T, B, V) layout.
    tok = jnp.concatenate([src_tokens.reshape(nsrc),
                           tgt_tokens.reshape(ntgt) + ENG_V]).astype(jnp.int32)
    pos = jnp.concatenate([
        (jnp.arange(nsrc, dtype=jnp.int32) // B) + POS_ENC_OFF,
        (jnp.arange(ntgt, dtype=jnp.int32) // B) + POS_DEC_OFF])
    lanes = jnp.arange(VPAD, dtype=jnp.int32)[None, :]
    twohot = ((tok[:, None] == lanes) | (pos[:, None] == lanes)).astype(jnp.float32)

    # additive attention masks: block-diagonal over batch (+ causal for decoder self)
    def mask(nq, nk, causal):
        r = jnp.arange(nq, dtype=jnp.int32)[:, None]
        c = jnp.arange(nk, dtype=jnp.int32)[None, :]
        ok = (r % B) == (c % B)
        if causal:
            ok = ok & ((r // B) >= (c // B))
        return jnp.where(ok, jnp.float32(0.0), jnp.float32(NEG))

    nq = max(nsrc, ntgt)

    def padq(m):
        return jnp.pad(m, ((0, nq - m.shape[0]), (0, 0)))

    masks = jnp.concatenate([padq(mask(nsrc, nsrc, False)),
                             padq(mask(ntgt, ntgt, True)),
                             padq(mask(ntgt, nsrc, False))], axis=1)

    kernel = functools.partial(ed_transformer_kernel, nsrc=nsrc, ntgt=ntgt)

    rows = nsrc + ntgt
    flops = 2 * (rows * VPAD * D                                     # embedding
                 + nsrc * D * 3 * D + 2 * nsrc * nsrc * D + nsrc * D * D   # enc self-attn
                 + 2 * nsrc * D * FF                                  # enc FFN
                 + ntgt * D * 3 * D + 2 * ntgt * ntgt * D + ntgt * D * D   # dec self-attn
                 + ntgt * D * D + nsrc * D * 2 * D + 2 * ntgt * nsrc * D + ntgt * D * D
                 + 2 * ntgt * D * FF                                  # dec FFN
                 + ntgt * D * VPAD)                                   # out proj
    transcendentals = nsrc * nsrc + ntgt * ntgt + ntgt * nsrc + 10 * rows
    bytes_accessed = 4 * (twohot.size + masks.size + packed['slab_a'].size
                          + packed['slab_b'].size + packed['slab_c'].size + ntgt * VPAD)

    logits = pl.pallas_call(
        kernel,
        out_shape=jax.ShapeDtypeStruct((ntgt, VPAD), jnp.float32),
        in_specs=[pl.BlockSpec(memory_space=pltpu.MemorySpace.VMEM)] * 5,
        out_specs=pl.BlockSpec(memory_space=pltpu.MemorySpace.VMEM),
        cost_estimate=pl.CostEstimate(flops=flops,
                                      transcendentals=transcendentals,
                                      bytes_accessed=bytes_accessed),
    )(twohot, masks, packed['slab_a'], packed['slab_b'], packed['slab_c'])

    # strip vocab lane padding, restore (T, B, output_size)
    return logits.reshape(T, B, VPAD)[:, :, :PARSED_V]


# ----------------------------------------------------------------------------
if __name__ == "__main__":
    key = jax.random.PRNGKey(0)
    k_params, k_emb, k_src, k_tgt = jax.random.split(key, 4)

    raw_params = make_params(k_params)
    embeddings = make_embeddings(k_emb)
    packed = pack_params(raw_params, embeddings)

    B, S, T = 2, CTX, CTX
    src = jax.random.randint(k_src, (S, B), 0, ENG_V, dtype=jnp.int32)
    tgt = jax.random.randint(k_tgt, (T, B), 0, PARSED_V, dtype=jnp.int32)

    out = ed_transformer_forward(src, tgt, packed)
    jax.block_until_ready(out)
    assert out.shape == (T, B, PARSED_V)
    assert bool(jnp.all(jnp.isfinite(out)))
    print("KERNEL_OK")
</pallas_src>

<mosaic_0001>
module attributes {stable_mosaic.version = 11 : i64} {
  func.func @ed_transformer_kernel(%arg0: memref<32x128xf32, #tpu.memory_space<vmem>>, %arg1: memref<16x48xf32, #tpu.memory_space<vmem>>, %arg2: memref<32x768xf32, #tpu.memory_space<vmem>>, %arg3: memref<128x96xf32, #tpu.memory_space<vmem>>, %arg4: memref<25x128xf32, #tpu.memory_space<vmem>>, %arg5: memref<16x128xf32, #tpu.memory_space<vmem>>) attributes {dimension_semantics = [], scalar_prefetch = 0 : i64, scratch_operands = 0 : i64, tpu.core_type = #tpu.core_type<tc>} {
    %c0 = arith.constant 0 : index
    %c0_0 = arith.constant 0 : index
    %0 = vector.load %arg4[%c0, %c0_0] : memref<25x128xf32, #tpu.memory_space<vmem>>, vector<25x128xf32>
    %c0_1 = arith.constant 0 : index
    %c0_2 = arith.constant 0 : index
    %1 = vector.load %arg0[%c0_1, %c0_2] : memref<32x128xf32, #tpu.memory_space<vmem>>, vector<32x128xf32>
    %c0_3 = arith.constant 0 : index
    %c64 = arith.constant 64 : index
    %2 = vector.load %arg3[%c0_3, %c64] : memref<128x96xf32, #tpu.memory_space<vmem>>, vector<128x32xf32>
    %cst = arith.constant dense<0.000000e+00> : vector<32x32xf32>
    %3 = tpu.matmul %1, %2, %cst {dimension_numbers = #tpu.dot_dimension_numbers<[1], [0], [0], [1], [0, 0, 1, 1], [], []>} : vector<32x128xf32>, vector<128x32xf32>, vector<32x32xf32> -> vector<32x32xf32>
    %4 = vector.extract_strided_slice %3 {offsets = [0, 0], sizes = [16, 32], strides = [1, 1]} : vector<32x32xf32> to vector<16x32xf32>
    %5 = vector.extract_strided_slice %3 {offsets = [16, 0], sizes = [16, 32], strides = [1, 1]} : vector<32x32xf32> to vector<16x32xf32>
    %c0_4 = arith.constant 0 : index
    %c0_5 = arith.constant 0 : index
    %6 = vector.load %arg1[%c0_4, %c0_5] : memref<16x48xf32, #tpu.memory_space<vmem>>, vector<16x16xf32>
    %c0_6 = arith.constant 0 : index
    %c16 = arith.constant 16 : index
    %7 = vector.load %arg1[%c0_6, %c16] : memref<16x48xf32, #tpu.memory_space<vmem>>, vector<16x16xf32>
    %c0_7 = arith.constant 0 : index
    %c32 = arith.constant 32 : index
    %8 = vector.load %arg1[%c0_7, %c32] : memref<16x48xf32, #tpu.memory_space<vmem>>, vector<16x16xf32>
    %c0_8 = arith.constant 0 : index
    %c0_9 = arith.constant 0 : index
    %9 = vector.load %arg2[%c0_8, %c0_9] : memref<32x768xf32, #tpu.memory_space<vmem>>, vector<32x96xf32>
    %cst_10 = arith.constant dense<0.000000e+00> : vector<16x96xf32>
    %10 = tpu.matmul %4, %9, %cst_10 {dimension_numbers = #tpu.dot_dimension_numbers<[1], [0], [0], [1], [0, 0, 1, 1], [], []>} : vector<16x32xf32>, vector<32x96xf32>, vector<16x96xf32> -> vector<16x96xf32>
    %11 = vector.extract_strided_slice %0 {offsets = [0, 0], sizes = [1, 96], strides = [1, 1]} : vector<25x128xf32> to vector<1x96xf32>
    %12 = vector.broadcast %11 : vector<1x96xf32> to vector<16x96xf32>
    %13 = arith.addf %10, %12 : vector<16x96xf32>
    %14 = vector.extract_strided_slice %13 {offsets = [0, 0], sizes = [16, 32], strides = [1, 1]} : vector<16x96xf32> to vector<16x32xf32>
    %15 = vector.extract_strided_slice %13 {offsets = [0, 32], sizes = [16, 32], strides = [1, 1]} : vector<16x96xf32> to vector<16x32xf32>
    %16 = vector.extract_strided_slice %13 {offsets = [0, 64], sizes = [16, 32], strides = [1, 1]} : vector<16x96xf32> to vector<16x32xf32>
    %cst_11 = arith.constant dense<0.000000e+00> : vector<16x16xf32>
    %17 = tpu.matmul %14, %15, %cst_11 {dimension_numbers = #tpu.dot_dimension_numbers<[1], [1], [0], [0], [0, 0, 1, 0], [], []>} : vector<16x32xf32>, vector<16x32xf32>, vector<16x16xf32> -> vector<16x16xf32>
    %18 = arith.addf %17, %6 : vector<16x16xf32>
    %cst_12 = arith.constant dense<0xFF800000> : vector<16xf32>
    %19 = vector.multi_reduction <maximumf>, %18, %cst_12 [1] : vector<16x16xf32> to vector<16xf32>
    %20 = vector.shape_cast %19 : vector<16xf32> to vector<16x1xf32>
    %21 = vector.broadcast %20 : vector<16x1xf32> to vector<16x16xf32>
    %22 = arith.subf %18, %21 : vector<16x16xf32>
    %23 = math.exp %22 : vector<16x16xf32>
    %cst_13 = arith.constant dense<0.000000e+00> : vector<16xf32>
    %24 = vector.multi_reduction <add>, %23, %cst_13 [1] : vector<16x16xf32> to vector<16xf32>
    %25 = vector.shape_cast %24 : vector<16xf32> to vector<16x1xf32>
    %26 = tpu.reciprocal %25 {approx = true} : vector<16x1xf32> -> vector<16x1xf32>
    %27 = vector.broadcast %26 : vector<16x1xf32> to vector<16x16xf32>
    %28 = arith.mulf %23, %27 : vector<16x16xf32>
    %cst_14 = arith.constant dense<0.000000e+00> : vector<16x32xf32>
    %29 = tpu.matmul %28, %16, %cst_14 {dimension_numbers = #tpu.dot_dimension_numbers<[1], [0], [0], [1], [0, 0, 1, 1], [], []>} : vector<16x16xf32>, vector<16x32xf32>, vector<16x32xf32> -> vector<16x32xf32>
    %c0_15 = arith.constant 0 : index
    %c96 = arith.constant 96 : index
    %30 = vector.load %arg2[%c0_15, %c96] : memref<32x768xf32, #tpu.memory_space<vmem>>, vector<32x32xf32>
    %cst_16 = arith.constant dense<0.000000e+00> : vector<16x32xf32>
    %31 = tpu.matmul %29, %30, %cst_16 {dimension_numbers = #tpu.dot_dimension_numbers<[1], [0], [0], [1], [0, 0, 1, 1], [], []>} : vector<16x32xf32>, vector<32x32xf32>, vector<16x32xf32> -> vector<16x32xf32>
    %32 = vector.extract_strided_slice %0 {offsets = [1, 0], sizes = [1, 32], strides = [1, 1]} : vector<25x128xf32> to vector<1x32xf32>
    %33 = vector.broadcast %32 : vector<1x32xf32> to vector<16x32xf32>
    %34 = arith.addf %31, %33 : vector<16x32xf32>
    %35 = arith.addf %4, %34 : vector<16x32xf32>
    %36 = vector.extract_strided_slice %0 {offsets = [11, 0], sizes = [1, 32], strides = [1, 1]} : vector<25x128xf32> to vector<1x32xf32>
    %37 = vector.extract_strided_slice %0 {offsets = [12, 0], sizes = [1, 32], strides = [1, 1]} : vector<25x128xf32> to vector<1x32xf32>
    %cst_17 = arith.constant dense<0.000000e+00> : vector<16xf32>
    %38 = vector.multi_reduction <add>, %35, %cst_17 [1] : vector<16x32xf32> to vector<16xf32>
    %39 = vector.shape_cast %38 : vector<16xf32> to vector<16x1xf32>
    %cst_18 = arith.constant 3.200000e+01 : f32
    %40 = vector.broadcast %cst_18 : f32 to vector<16x1xf32>
    %41 = arith.divf %39, %40 : vector<16x1xf32>
    %42 = vector.broadcast %41 : vector<16x1xf32> to vector<16x32xf32>
    %43 = arith.subf %35, %42 : vector<16x32xf32>
    %44 = arith.mulf %43, %43 : vector<16x32xf32>
    %cst_19 = arith.constant dense<0.000000e+00> : vector<16xf32>
    %45 = vector.multi_reduction <add>, %44, %cst_19 [1] : vector<16x32xf32> to vector<16xf32>
    %46 = vector.shape_cast %45 : vector<16xf32> to vector<16x1xf32>
    %cst_20 = arith.constant 3.200000e+01 : f32
    %47 = vector.broadcast %cst_20 : f32 to vector<16x1xf32>
    %48 = arith.divf %46, %47 : vector<16x1xf32>
    %cst_21 = arith.constant 9.99999974E-6 : f32
    %49 = vector.broadcast %cst_21 : f32 to vector<16x1xf32>
    %50 = arith.addf %48, %49 : vector<16x1xf32>
    %51 = math.rsqrt %50 : vector<16x1xf32>
    %52 = vector.broadcast %51 : vector<16x1xf32> to vector<16x32xf32>
    %53 = arith.mulf %43, %52 : vector<16x32xf32>
    %54 = vector.broadcast %36 : vector<1x32xf32> to vector<16x32xf32>
    %55 = arith.mulf %53, %54 : vector<16x32xf32>
    %56 = vector.broadcast %37 : vector<1x32xf32> to vector<16x32xf32>
    %57 = arith.addf %55, %56 : vector<16x32xf32>
    %c0_22 = arith.constant 0 : index
    %c128 = arith.constant 128 : index
    %58 = vector.load %arg2[%c0_22, %c128] : memref<32x768xf32, #tpu.memory_space<vmem>>, vector<32x128xf32>
    %c0_23 = arith.constant 0 : index
    %c0_24 = arith.constant 0 : index
    %59 = vector.load %arg3[%c0_23, %c0_24] : memref<128x96xf32, #tpu.memory_space<vmem>>, vector<128x32xf32>
    %cst_25 = arith.constant dense<0.000000e+00> : vector<16x128xf32>
    %60 = tpu.matmul %57, %58, %cst_25 {dimension_numbers = #tpu.dot_dimension_numbers<[1], [0], [0], [1], [0, 0, 1, 1], [], []>} : vector<16x32xf32>, vector<32x128xf32>, vector<16x128xf32> -> vector<16x128xf32>
    %61 = vector.extract_strided_slice %0 {offsets = [2, 0], sizes = [1, 128], strides = [1, 1]} : vector<25x128xf32> to vector<1x128xf32>
    %62 = vector.broadcast %61 : vector<1x128xf32> to vector<16x128xf32>
    %63 = arith.addf %60, %62 : vector<16x128xf32>
    %cst_26 = arith.constant 0.000000e+00 : f32
    %64 = vector.broadcast %cst_26 : f32 to vector<16x128xf32>
    %65 = arith.maximumf %63, %64 : vector<16x128xf32>
    %cst_27 = arith.constant dense<0.000000e+00> : vector<16x32xf32>
    %66 = tpu.matmul %65, %59, %cst_27 {dimension_numbers = #tpu.dot_dimension_numbers<[1], [0], [0], [1], [0, 0, 1, 1], [], []>} : vector<16x128xf32>, vector<128x32xf32>, vector<16x32xf32> -> vector<16x32xf32>
    %67 = vector.extract_strided_slice %0 {offsets = [3, 0], sizes = [1, 32], strides = [1, 1]} : vector<25x128xf32> to vector<1x32xf32>
    %68 = vector.broadcast %67 : vector<1x32xf32> to vector<16x32xf32>
    %69 = arith.addf %66, %68 : vector<16x32xf32>
    %70 = arith.addf %57, %69 : vector<16x32xf32>
    %71 = vector.extract_strided_slice %0 {offsets = [13, 0], sizes = [1, 32], strides = [1, 1]} : vector<25x128xf32> to vector<1x32xf32>
    %72 = vector.extract_strided_slice %0 {offsets = [14, 0], sizes = [1, 32], strides = [1, 1]} : vector<25x128xf32> to vector<1x32xf32>
    %cst_28 = arith.constant dense<0.000000e+00> : vector<16xf32>
    %73 = vector.multi_reduction <add>, %70, %cst_28 [1] : vector<16x32xf32> to vector<16xf32>
    %74 = vector.shape_cast %73 : vector<16xf32> to vector<16x1xf32>
    %cst_29 = arith.constant 3.200000e+01 : f32
    %75 = vector.broadcast %cst_29 : f32 to vector<16x1xf32>
    %76 = arith.divf %74, %75 : vector<16x1xf32>
    %77 = vector.broadcast %76 : vector<16x1xf32> to vector<16x32xf32>
    %78 = arith.subf %70, %77 : vector<16x32xf32>
    %79 = arith.mulf %78, %78 : vector<16x32xf32>
    %cst_30 = arith.constant dense<0.000000e+00> : vector<16xf32>
    %80 = vector.multi_reduction <add>, %79, %cst_30 [1] : vector<16x32xf32> to vector<16xf32>
    %81 = vector.shape_cast %80 : vector<16xf32> to vector<16x1xf32>
    %cst_31 = arith.constant 3.200000e+01 : f32
    %82 = vector.broadcast %cst_31 : f32 to vector<16x1xf32>
    %83 = arith.divf %81, %82 : vector<16x1xf32>
    %cst_32 = arith.constant 9.99999974E-6 : f32
    %84 = vector.broadcast %cst_32 : f32 to vector<16x1xf32>
    %85 = arith.addf %83, %84 : vector<16x1xf32>
    %86 = math.rsqrt %85 : vector<16x1xf32>
    %87 = vector.broadcast %86 : vector<16x1xf32> to vector<16x32xf32>
    %88 = arith.mulf %78, %87 : vector<16x32xf32>
    %89 = vector.broadcast %71 : vector<1x32xf32> to vector<16x32xf32>
    %90 = arith.mulf %88, %89 : vector<16x32xf32>
    %91 = vector.broadcast %72 : vector<1x32xf32> to vector<16x32xf32>
    %92 = arith.addf %90, %91 : vector<16x32xf32>
    %93 = vector.extract_strided_slice %0 {offsets = [15, 0], sizes = [1, 32], strides = [1, 1]} : vector<25x128xf32> to vector<1x32xf32>
    %94 = vector.extract_strided_slice %0 {offsets = [16, 0], sizes = [1, 32], strides = [1, 1]} : vector<25x128xf32> to vector<1x32xf32>
    %cst_33 = arith.constant dense<0.000000e+00> : vector<16xf32>
    %95 = vector.multi_reduction <add>, %92, %cst_33 [1] : vector<16x32xf32> to vector<16xf32>
    %96 = vector.shape_cast %95 : vector<16xf32> to vector<16x1xf32>
    %cst_34 = arith.constant 3.200000e+01 : f32
    %97 = vector.broadcast %cst_34 : f32 to vector<16x1xf32>
    %98 = arith.divf %96, %97 : vector<16x1xf32>
    %99 = vector.broadcast %98 : vector<16x1xf32> to vector<16x32xf32>
    %100 = arith.subf %92, %99 : vector<16x32xf32>
    %101 = arith.mulf %100, %100 : vector<16x32xf32>
    %cst_35 = arith.constant dense<0.000000e+00> : vector<16xf32>
    %102 = vector.multi_reduction <add>, %101, %cst_35 [1] : vector<16x32xf32> to vector<16xf32>
    %103 = vector.shape_cast %102 : vector<16xf32> to vector<16x1xf32>
    %cst_36 = arith.constant 3.200000e+01 : f32
    %104 = vector.broadcast %cst_36 : f32 to vector<16x1xf32>
    %105 = arith.divf %103, %104 : vector<16x1xf32>
    %cst_37 = arith.constant 9.99999974E-6 : f32
    %106 = vector.broadcast %cst_37 : f32 to vector<16x1xf32>
    %107 = arith.addf %105, %106 : vector<16x1xf32>
    %108 = math.rsqrt %107 : vector<16x1xf32>
    %109 = vector.broadcast %108 : vector<16x1xf32> to vector<16x32xf32>
    %110 = arith.mulf %100, %109 : vector<16x32xf32>
    %111 = vector.broadcast %93 : vector<1x32xf32> to vector<16x32xf32>
    %112 = arith.mulf %110, %111 : vector<16x32xf32>
    %113 = vector.broadcast %94 : vector<1x32xf32> to vector<16x32xf32>
    %114 = arith.addf %112, %113 : vector<16x32xf32>
    %c0_38 = arith.constant 0 : index
    %c256 = arith.constant 256 : index
    %115 = vector.load %arg2[%c0_38, %c256] : memref<32x768xf32, #tpu.memory_space<vmem>>, vector<32x96xf32>
    %cst_39 = arith.constant dense<0.000000e+00> : vector<16x96xf32>
    %116 = tpu.matmul %5, %115, %cst_39 {dimension_numbers = #tpu.dot_dimension_numbers<[1], [0], [0], [1], [0, 0, 1, 1], [], []>} : vector<16x32xf32>, vector<32x96xf32>, vector<16x96xf32> -> vector<16x96xf32>
    %117 = vector.extract_strided_slice %0 {offsets = [4, 0], sizes = [1, 96], strides = [1, 1]} : vector<25x128xf32> to vector<1x96xf32>
    %118 = vector.broadcast %117 : vector<1x96xf32> to vector<16x96xf32>
    %119 = arith.addf %116, %118 : vector<16x96xf32>
    %120 = vector.extract_strided_slice %119 {offsets = [0, 0], sizes = [16, 32], strides = [1, 1]} : vector<16x96xf32> to vector<16x32xf32>
    %121 = vector.extract_strided_slice %119 {offsets = [0, 32], sizes = [16, 32], strides = [1, 1]} : vector<16x96xf32> to vector<16x32xf32>
    %122 = vector.extract_strided_slice %119 {offsets = [0, 64], sizes = [16, 32], strides = [1, 1]} : vector<16x96xf32> to vector<16x32xf32>
    %cst_40 = arith.constant dense<0.000000e+00> : vector<16x16xf32>
    %123 = tpu.matmul %120, %121, %cst_40 {dimension_numbers = #tpu.dot_dimension_numbers<[1], [1], [0], [0], [0, 0, 1, 0], [], []>} : vector<16x32xf32>, vector<16x32xf32>, vector<16x16xf32> -> vector<16x16xf32>
    %124 = arith.addf %123, %7 : vector<16x16xf32>
    %cst_41 = arith.constant dense<0xFF800000> : vector<16xf32>
    %125 = vector.multi_reduction <maximumf>, %124, %cst_41 [1] : vector<16x16xf32> to vector<16xf32>
    %126 = vector.shape_cast %125 : vector<16xf32> to vector<16x1xf32>
    %127 = vector.broadcast %126 : vector<16x1xf32> to vector<16x16xf32>
    %128 = arith.subf %124, %127 : vector<16x16xf32>
    %129 = math.exp %128 : vector<16x16xf32>
    %cst_42 = arith.constant dense<0.000000e+00> : vector<16xf32>
    %130 = vector.multi_reduction <add>, %129, %cst_42 [1] : vector<16x16xf32> to vector<16xf32>
    %131 = vector.shape_cast %130 : vector<16xf32> to vector<16x1xf32>
    %132 = tpu.reciprocal %131 {approx = true} : vector<16x1xf32> -> vector<16x1xf32>
    %133 = vector.broadcast %132 : vector<16x1xf32> to vector<16x16xf32>
    %134 = arith.mulf %129, %133 : vector<16x16xf32>
    %cst_43 = arith.constant dense<0.000000e+00> : vector<16x32xf32>
    %135 = tpu.matmul %134, %122, %cst_43 {dimension_numbers = #tpu.dot_dimension_numbers<[1], [0], [0], [1], [0, 0, 1, 1], [], []>} : vector<16x16xf32>, vector<16x32xf32>, vector<16x32xf32> -> vector<16x32xf32>
    %c0_44 = arith.constant 0 : index
    %c352 = arith.constant 352 : index
    %136 = vector.load %arg2[%c0_44, %c352] : memref<32x768xf32, #tpu.memory_space<vmem>>, vector<32x32xf32>
    %cst_45 = arith.constant dense<0.000000e+00> : vector<16x32xf32>
    %137 = tpu.matmul %135, %136, %cst_45 {dimension_numbers = #tpu.dot_dimension_numbers<[1], [0], [0], [1], [0, 0, 1, 1], [], []>} : vector<16x32xf32>, vector<32x32xf32>, vector<16x32xf32> -> vector<16x32xf32>
    %138 = vector.extract_strided_slice %0 {offsets = [5, 0], sizes = [1, 32], strides = [1, 1]} : vector<25x128xf32> to vector<1x32xf32>
    %139 = vector.broadcast %138 : vector<1x32xf32> to vector<16x32xf32>
    %140 = arith.addf %137, %139 : vector<16x32xf32>
    %141 = arith.addf %5, %140 : vector<16x32xf32>
    %142 = vector.extract_strided_slice %0 {offsets = [17, 0], sizes = [1, 32], strides = [1, 1]} : vector<25x128xf32> to vector<1x32xf32>
    %143 = vector.extract_strided_slice %0 {offsets = [18, 0], sizes = [1, 32], strides = [1, 1]} : vector<25x128xf32> to vector<1x32xf32>
    %cst_46 = arith.constant dense<0.000000e+00> : vector<16xf32>
    %144 = vector.multi_reduction <add>, %141, %cst_46 [1] : vector<16x32xf32> to vector<16xf32>
    %145 = vector.shape_cast %144 : vector<16xf32> to vector<16x1xf32>
    %cst_47 = arith.constant 3.200000e+01 : f32
    %146 = vector.broadcast %cst_47 : f32 to vector<16x1xf32>
    %147 = arith.divf %145, %146 : vector<16x1xf32>
    %148 = vector.broadcast %147 : vector<16x1xf32> to vector<16x32xf32>
    %149 = arith.subf %141, %148 : vector<16x32xf32>
    %150 = arith.mulf %149, %149 : vector<16x32xf32>
    %cst_48 = arith.constant dense<0.000000e+00> : vector<16xf32>
    %151 = vector.multi_reduction <add>, %150, %cst_48 [1] : vector<16x32xf32> to vector<16xf32>
    %152 = vector.shape_cast %151 : vector<16xf32> to vector<16x1xf32>
    %cst_49 = arith.constant 3.200000e+01 : f32
    %153 = vector.broadcast %cst_49 : f32 to vector<16x1xf32>
    %154 = arith.divf %152, %153 : vector<16x1xf32>
    %cst_50 = arith.constant 9.99999974E-6 : f32
    %155 = vector.broadcast %cst_50 : f32 to vector<16x1xf32>
    %156 = arith.addf %154, %155 : vector<16x1xf32>
    %157 = math.rsqrt %156 : vector<16x1xf32>
    %158 = vector.broadcast %157 : vector<16x1xf32> to vector<16x32xf32>
    %159 = arith.mulf %149, %158 : vector<16x32xf32>
    %160 = vector.broadcast %142 : vector<1x32xf32> to vector<16x32xf32>
    %161 = arith.mulf %159, %160 : vector<16x32xf32>
    %162 = vector.broadcast %143 : vector<1x32xf32> to vector<16x32xf32>
    %163 = arith.addf %161, %162 : vector<16x32xf32>
    %164 = vector.extract_strided_slice %0 {offsets = [6, 0], sizes = [1, 96], strides = [1, 1]} : vector<25x128xf32> to vector<1x96xf32>
    %c0_51 = arith.constant 0 : index
    %c384 = arith.constant 384 : index
    %165 = vector.load %arg2[%c0_51, %c384] : memref<32x768xf32, #tpu.memory_space<vmem>>, vector<32x32xf32>
    %c0_52 = arith.constant 0 : index
    %c416 = arith.constant 416 : index
    %166 = vector.load %arg2[%c0_52, %c416] : memref<32x768xf32, #tpu.memory_space<vmem>>, vector<32x64xf32>
    %cst_53 = arith.constant dense<0.000000e+00> : vector<16x32xf32>
    %167 = tpu.matmul %163, %165, %cst_53 {dimension_numbers = #tpu.dot_dimension_numbers<[1], [0], [0], [1], [0, 0, 1, 1], [], []>} : vector<16x32xf32>, vector<32x32xf32>, vector<16x32xf32> -> vector<16x32xf32>
    %168 = vector.extract_strided_slice %164 {offsets = [0, 0], sizes = [1, 32], strides = [1, 1]} : vector<1x96xf32> to vector<1x32xf32>
    %169 = vector.broadcast %168 : vector<1x32xf32> to vector<16x32xf32>
    %170 = arith.addf %167, %169 : vector<16x32xf32>
    %cst_54 = arith.constant dense<0.000000e+00> : vector<16x64xf32>
    %171 = tpu.matmul %114, %166, %cst_54 {dimension_numbers = #tpu.dot_dimension_numbers<[1], [0], [0], [1], [0, 0, 1, 1], [], []>} : vector<16x32xf32>, vector<32x64xf32>, vector<16x64xf32> -> vector<16x64xf32>
    %172 = vector.extract_strided_slice %164 {offsets = [0, 32], sizes = [1, 64], strides = [1, 1]} : vector<1x96xf32> to vector<1x64xf32>
    %173 = vector.broadcast %172 : vector<1x64xf32> to vector<16x64xf32>
    %174 = arith.addf %171, %173 : vector<16x64xf32>
    %175 = vector.extract_strided_slice %174 {offsets = [0, 0], sizes = [16, 32], strides = [1, 1]} : vector<16x64xf32> to vector<16x32xf32>
    %176 = vector.extract_strided_slice %174 {offsets = [0, 32], sizes = [16, 32], strides = [1, 1]} : vector<16x64xf32> to vector<16x32xf32>
    %cst_55 = arith.constant dense<0.000000e+00> : vector<16x16xf32>
    %177 = tpu.matmul %170, %175, %cst_55 {dimension_numbers = #tpu.dot_dimension_numbers<[1], [1], [0], [0], [0, 0, 1, 0], [], []>} : vector<16x32xf32>, vector<16x32xf32>, vector<16x16xf32> -> vector<16x16xf32>
    %178 = arith.addf %177, %8 : vector<16x16xf32>
    %cst_56 = arith.constant dense<0xFF800000> : vector<16xf32>
    %179 = vector.multi_reduction <maximumf>, %178, %cst_56 [1] : vector<16x16xf32> to vector<16xf32>
    %180 = vector.shape_cast %179 : vector<16xf32> to vector<16x1xf32>
    %181 = vector.broadcast %180 : vector<16x1xf32> to vector<16x16xf32>
    %182 = arith.subf %178, %181 : vector<16x16xf32>
    %183 = math.exp %182 : vector<16x16xf32>
    %cst_57 = arith.constant dense<0.000000e+00> : vector<16xf32>
    %184 = vector.multi_reduction <add>, %183, %cst_57 [1] : vector<16x16xf32> to vector<16xf32>
    %185 = vector.shape_cast %184 : vector<16xf32> to vector<16x1xf32>
    %186 = tpu.reciprocal %185 {approx = true} : vector<16x1xf32> -> vector<16x1xf32>
    %187 = vector.broadcast %186 : vector<16x1xf32> to vector<16x16xf32>
    %188 = arith.mulf %183, %187 : vector<16x16xf32>
    %cst_58 = arith.constant dense<0.000000e+00> : vector<16x32xf32>
    %189 = tpu.matmul %188, %176, %cst_58 {dimension_numbers = #tpu.dot_dimension_numbers<[1], [0], [0], [1], [0, 0, 1, 1], [], []>} : vector<16x16xf32>, vector<16x32xf32>, vector<16x32xf32> -> vector<16x32xf32>
    %c0_59 = arith.constant 0 : index
    %c480 = arith.constant 480 : index
    %190 = vector.load %arg2[%c0_59, %c480] : memref<32x768xf32, #tpu.memory_space<vmem>>, vector<32x32xf32>
    %cst_60 = arith.constant dense<0.000000e+00> : vector<16x32xf32>
    %191 = tpu.matmul %189, %190, %cst_60 {dimension_numbers = #tpu.dot_dimension_numbers<[1], [0], [0], [1], [0, 0, 1, 1], [], []>} : vector<16x32xf32>, vector<32x32xf32>, vector<16x32xf32> -> vector<16x32xf32>
    %192 = vector.extract_strided_slice %0 {offsets = [7, 0], sizes = [1, 32], strides = [1, 1]} : vector<25x128xf32> to vector<1x32xf32>
    %193 = vector.broadcast %192 : vector<1x32xf32> to vector<16x32xf32>
    %194 = arith.addf %191, %193 : vector<16x32xf32>
    %195 = arith.addf %163, %194 : vector<16x32xf32>
    %196 = vector.extract_strided_slice %0 {offsets = [19, 0], sizes = [1, 32], strides = [1, 1]} : vector<25x128xf32> to vector<1x32xf32>
    %197 = vector.extract_strided_slice %0 {offsets = [20, 0], sizes = [1, 32], strides = [1, 1]} : vector<25x128xf32> to vector<1x32xf32>
    %cst_61 = arith.constant dense<0.000000e+00> : vector<16xf32>
    %198 = vector.multi_reduction <add>, %195, %cst_61 [1] : vector<16x32xf32> to vector<16xf32>
    %199 = vector.shape_cast %198 : vector<16xf32> to vector<16x1xf32>
    %cst_62 = arith.constant 3.200000e+01 : f32
    %200 = vector.broadcast %cst_62 : f32 to vector<16x1xf32>
    %201 = arith.divf %199, %200 : vector<16x1xf32>
    %202 = vector.broadcast %201 : vector<16x1xf32> to vector<16x32xf32>
    %203 = arith.subf %195, %202 : vector<16x32xf32>
    %204 = arith.mulf %203, %203 : vector<16x32xf32>
    %cst_63 = arith.constant dense<0.000000e+00> : vector<16xf32>
    %205 = vector.multi_reduction <add>, %204, %cst_63 [1] : vector<16x32xf32> to vector<16xf32>
    %206 = vector.shape_cast %205 : vector<16xf32> to vector<16x1xf32>
    %cst_64 = arith.constant 3.200000e+01 : f32
    %207 = vector.broadcast %cst_64 : f32 to vector<16x1xf32>
    %208 = arith.divf %206, %207 : vector<16x1xf32>
    %cst_65 = arith.constant 9.99999974E-6 : f32
    %209 = vector.broadcast %cst_65 : f32 to vector<16x1xf32>
    %210 = arith.addf %208, %209 : vector<16x1xf32>
    %211 = math.rsqrt %210 : vector<16x1xf32>
    %212 = vector.broadcast %211 : vector<16x1xf32> to vector<16x32xf32>
    %213 = arith.mulf %203, %212 : vector<16x32xf32>
    %214 = vector.broadcast %196 : vector<1x32xf32> to vector<16x32xf32>
    %215 = arith.mulf %213, %214 : vector<16x32xf32>
    %216 = vector.broadcast %197 : vector<1x32xf32> to vector<16x32xf32>
    %217 = arith.addf %215, %216 : vector<16x32xf32>
    %c0_66 = arith.constant 0 : index
    %c512 = arith.constant 512 : index
    %218 = vector.load %arg2[%c0_66, %c512] : memref<32x768xf32, #tpu.memory_space<vmem>>, vector<32x128xf32>
    %c0_67 = arith.constant 0 : index
    %c32_68 = arith.constant 32 : index
    %219 = vector.load %arg3[%c0_67, %c32_68] : memref<128x96xf32, #tpu.memory_space<vmem>>, vector<128x32xf32>
    %cst_69 = arith.constant dense<0.000000e+00> : vector<16x128xf32>
    %220 = tpu.matmul %217, %218, %cst_69 {dimension_numbers = #tpu.dot_dimension_numbers<[1], [0], [0], [1], [0, 0, 1, 1], [], []>} : vector<16x32xf32>, vector<32x128xf32>, vector<16x128xf32> -> vector<16x128xf32>
    %221 = vector.extract_strided_slice %0 {offsets = [8, 0], sizes = [1, 128], strides = [1, 1]} : vector<25x128xf32> to vector<1x128xf32>
    %222 = vector.broadcast %221 : vector<1x128xf32> to vector<16x128xf32>
    %223 = arith.addf %220, %222 : vector<16x128xf32>
    %cst_70 = arith.constant 0.000000e+00 : f32
    %224 = vector.broadcast %cst_70 : f32 to vector<16x128xf32>
    %225 = arith.maximumf %223, %224 : vector<16x128xf32>
    %cst_71 = arith.constant dense<0.000000e+00> : vector<16x32xf32>
    %226 = tpu.matmul %225, %219, %cst_71 {dimension_numbers = #tpu.dot_dimension_numbers<[1], [0], [0], [1], [0, 0, 1, 1], [], []>} : vector<16x128xf32>, vector<128x32xf32>, vector<16x32xf32> -> vector<16x32xf32>
    %227 = vector.extract_strided_slice %0 {offsets = [9, 0], sizes = [1, 32], strides = [1, 1]} : vector<25x128xf32> to vector<1x32xf32>
    %228 = vector.broadcast %227 : vector<1x32xf32> to vector<16x32xf32>
    %229 = arith.addf %226, %228 : vector<16x32xf32>
    %230 = arith.addf %217, %229 : vector<16x32xf32>
    %231 = vector.extract_strided_slice %0 {offsets = [21, 0], sizes = [1, 32], strides = [1, 1]} : vector<25x128xf32> to vector<1x32xf32>
    %232 = vector.extract_strided_slice %0 {offsets = [22, 0], sizes = [1, 32], strides = [1, 1]} : vector<25x128xf32> to vector<1x32xf32>
    %cst_72 = arith.constant dense<0.000000e+00> : vector<16xf32>
    %233 = vector.multi_reduction <add>, %230, %cst_72 [1] : vector<16x32xf32> to vector<16xf32>
    %234 = vector.shape_cast %233 : vector<16xf32> to vector<16x1xf32>
    %cst_73 = arith.constant 3.200000e+01 : f32
    %235 = vector.broadcast %cst_73 : f32 to vector<16x1xf32>
    %236 = arith.divf %234, %235 : vector<16x1xf32>
    %237 = vector.broadcast %236 : vector<16x1xf32> to vector<16x32xf32>
    %238 = arith.subf %230, %237 : vector<16x32xf32>
    %239 = arith.mulf %238, %238 : vector<16x32xf32>
    %cst_74 = arith.constant dense<0.000000e+00> : vector<16xf32>
    %240 = vector.multi_reduction <add>, %239, %cst_74 [1] : vector<16x32xf32> to vector<16xf32>
    %241 = vector.shape_cast %240 : vector<16xf32> to vector<16x1xf32>
    %cst_75 = arith.constant 3.200000e+01 : f32
    %242 = vector.broadcast %cst_75 : f32 to vector<16x1xf32>
    %243 = arith.divf %241, %242 : vector<16x1xf32>
    %cst_76 = arith.constant 9.99999974E-6 : f32
    %244 = vector.broadcast %cst_76 : f32 to vector<16x1xf32>
    %245 = arith.addf %243, %244 : vector<16x1xf32>
    %246 = math.rsqrt %245 : vector<16x1xf32>
    %247 = vector.broadcast %246 : vector<16x1xf32> to vector<16x32xf32>
    %248 = arith.mulf %238, %247 : vector<16x32xf32>
    %249 = vector.broadcast %231 : vector<1x32xf32> to vector<16x32xf32>
    %250 = arith.mulf %248, %249 : vector<16x32xf32>
    %251 = vector.broadcast %232 : vector<1x32xf32> to vector<16x32xf32>
    %252 = arith.addf %250, %251 : vector<16x32xf32>
    %253 = vector.extract_strided_slice %0 {offsets = [23, 0], sizes = [1, 32], strides = [1, 1]} : vector<25x128xf32> to vector<1x32xf32>
    %254 = vector.extract_strided_slice %0 {offsets = [24, 0], sizes = [1, 32], strides = [1, 1]} : vector<25x128xf32> to vector<1x32xf32>
    %cst_77 = arith.constant dense<0.000000e+00> : vector<16xf32>
    %255 = vector.multi_reduction <add>, %252, %cst_77 [1] : vector<16x32xf32> to vector<16xf32>
    %256 = vector.shape_cast %255 : vector<16xf32> to vector<16x1xf32>
    %cst_78 = arith.constant 3.200000e+01 : f32
    %257 = vector.broadcast %cst_78 : f32 to vector<16x1xf32>
    %258 = arith.divf %256, %257 : vector<16x1xf32>
    %259 = vector.broadcast %258 : vector<16x1xf32> to vector<16x32xf32>
    %260 = arith.subf %252, %259 : vector<16x32xf32>
    %261 = arith.mulf %260, %260 : vector<16x32xf32>
    %cst_79 = arith.constant dense<0.000000e+00> : vector<16xf32>
    %262 = vector.multi_reduction <add>, %261, %cst_79 [1] : vector<16x32xf32> to vector<16xf32>
    %263 = vector.shape_cast %262 : vector<16xf32> to vector<16x1xf32>
    %cst_80 = arith.constant 3.200000e+01 : f32
    %264 = vector.broadcast %cst_80 : f32 to vector<16x1xf32>
    %265 = arith.divf %263, %264 : vector<16x1xf32>
    %cst_81 = arith.constant 9.99999974E-6 : f32
    %266 = vector.broadcast %cst_81 : f32 to vector<16x1xf32>
    %267 = arith.addf %265, %266 : vector<16x1xf32>
    %268 = math.rsqrt %267 : vector<16x1xf32>
    %269 = vector.broadcast %268 : vector<16x1xf32> to vector<16x32xf32>
    %270 = arith.mulf %260, %269 : vector<16x32xf32>
    %271 = vector.broadcast %253 : vector<1x32xf32> to vector<16x32xf32>
    %272 = arith.mulf %270, %271 : vector<16x32xf32>
    %273 = vector.broadcast %254 : vector<1x32xf32> to vector<16x32xf32>
    %274 = arith.addf %272, %273 : vector<16x32xf32>
    %c0_82 = arith.constant 0 : index
    %c640 = arith.constant 640 : index
    %275 = vector.load %arg2[%c0_82, %c640] : memref<32x768xf32, #tpu.memory_space<vmem>>, vector<32x128xf32>
    %cst_83 = arith.constant dense<0.000000e+00> : vector<16x128xf32>
    %276 = tpu.matmul %274, %275, %cst_83 {dimension_numbers = #tpu.dot_dimension_numbers<[1], [0], [0], [1], [0, 0, 1, 1], [], []>} : vector<16x32xf32>, vector<32x128xf32>, vector<16x128xf32> -> vector<16x128xf32>
    %277 = vector.extract_strided_slice %0 {offsets = [10, 0], sizes = [1, 128], strides = [1, 1]} : vector<25x128xf32> to vector<1x128xf32>
    %278 = vector.broadcast %277 : vector<1x128xf32> to vector<16x128xf32>
    %279 = arith.addf %276, %278 : vector<16x128xf32>
    %c0_84 = arith.constant 0 : index
    %c0_85 = arith.constant 0 : index
    %280 = vector.load %arg5[%c0_84, %c0_85] : memref<16x128xf32, #tpu.memory_space<vmem>>, vector<16x128xf32>
    tpu.vector_store %arg5[%c0_84, %c0_85], %279 {strides = array<i32>} : memref<16x128xf32, #tpu.memory_space<vmem>>, vector<16x128xf32>,
    return
  }
}

</mosaic_0001>

<bundles_post_ra>
// kernel: ed_transformer_forward.1
= control target key start
LH: loop header
LB: loop body
LE: loop exit
PB: predicated region body
PF: predicated region fallthrough
CT: control target
= control target key end

     0   :  { %s1590_s26 = smov 64   ;;  %s2200_s0 = inlined_call_operand.vmem [shape: f32[32,128], index: 0, kind: input, shape index: {}]   ;;  %s2201_s1 = inlined_call_operand.vmem [shape: f32[16,48], index: 1, kind: input, shape index: {}]   ;;  %s2202_s2 = inlined_call_operand.vmem [shape: f32[32,768], index: 2, kind: input, shape index: {}]   ;;  %s2203_s3 = inlined_call_operand.vmem [shape: f32[128,96], index: 3, kind: input, shape index: {}]   ;;  %s2204_s4 = inlined_call_operand.vmem [shape: f32[25,128], index: 4, kind: input, shape index: {}]   ;;  %s2205_s5 = inlined_call_operand.hbm [shape: f32[16,128], index: 5, kind: output, shape index: {}]  }
   0x1   :  { %v1631_v0 = vld [vmem:[%s2203_s3 + $0x70] sm:$0xff]  ;;  %v1636_v1 = vld [vmem:[%s2203_s3 + $0x78] sm:$0xff]  ;;  %v1656_v6 = vld [vmem:[%s2203_s3 + $0x60] sm:$0xff] }
   0x2   :  { %v1356_v2 = vpack.i.bf16 %v1631_v0, %v1636_v1  ;;  %v1643_v3 = vld [vmem:[%s2203_s3 + $0x50] sm:$0xff]  ;;  %v1648_v4 = vld [vmem:[%s2203_s3 + $0x58] sm:$0xff]  ;;  %v1661_v7 = vld [vmem:[%s2203_s3 + $0x68] sm:$0xff] }
   0x3   :  { %v1366_v5 = vpack.i.bf16 %v1643_v3, %v1648_v4  ;;  %v1667_v8 = vld [vmem:[%s2203_s3 + $0x40] sm:$0xff]  ;;  %v1672_v9 = vld [vmem:[%s2203_s3 + $0x30] sm:$0xff]  ;;  %v1677_v10 = vld [vmem:[%s2203_s3 + $0x38] sm:$0xff] }
   0x4   :  { %1357 = vrot.lane.b32.xlu0 %v1356_v2, %s1590_s26  ;;  %v1682_v11 = vld [vmem:[%s2203_s3 + $0x48] sm:$0xff]  ;;  %v1376_v12 = vpack.i.bf16 %v1672_v9, %v1677_v10 }
   0x5   :  { %1367 = vrot.lane.b32.xlu1 %v1366_v5, %s1590_s26 }
   0x6   :  { %10 = vsyncpa [#allocation3], 0  ;;  %v1361_v13 = vpack.i.bf16 %v1656_v6, %v1661_v7  ;;  %1377 = vrot.lane.b32.xlu2 %v1376_v12, %s1590_s26  ;;  %v1371_v14 = vpack.i.bf16 %v1667_v8, %v1682_v11  ;;  %v1694_v15 = vld [vmem:[%s2203_s3 + $0x20] sm:$0xff]  ;;  %v1699_v16 = vld [vmem:[%s2203_s3 + $0x28] sm:$0xff]  ;;  %vm145_vm0 = vcmask 261120   ;;  %s1591_s16 = smov 96  }
   0x7   :  { %v1381_v17 = vpack.i.bf16 %v1694_v15, %v1699_v16  ;;  %v1708_v18 = vld [vmem:[%s2203_s3 + $0x10] sm:$0xff]  ;;  %v1713_v19 = vld [vmem:[%s2203_s3 + $0x18] sm:$0xff]  ;;  %v1718_v20 = vld [vmem:[%s2203_s3] sm:$0xff]  ;;  %vm212_vm1 = vcmask 130048   ;;  %s1594_s8 = smov 112   ;;  %s1595_s29 = smov [#allocation2]  }
   0x8   :  { %v1723_v21 = vld [vmem:[%s2203_s3 + $0x8] sm:$0xff]  ;;  %v1386_v22 = vpack.i.bf16 %v1708_v18, %v1713_v19  ;;  %v1735_v34 = vld [vmem:[%s2202_s2 + $0x90] sm:$0xff]  ;;  %v1740_v35 = vld [vmem:[%s2202_s2 + $0x60] sm:$0xff]  ;;  %s1596_s7 = smov 128  }
   0x9   :  { %v1391_v23 = vpack.i.bf16 %v1718_v20, %v1723_v21  ;;  %164 = vmatpush.msra.mxu1 %v1735_v34  ;;  %v1401_v38 = vpack.i.bf16 %v1740_v35, %v1735_v34  ;;  %v1748_v39 = vld [vmem:[%s2202_s2 + $0x30] sm:$0xff]  ;;  %v25_v52 = vld [vmem:[%s2200_s0] sm:$0xff]  ;;  %v26_v53 = vld [vmem:[%s2200_s0 + $0x8] sm:$0xff] }
   0xa   :  { %v1761_v54 = vld [vmem:[%s2202_s2] sm:$0xff]  ;;  %v1840_v34 = vld [vmem:[%s2202_s2 + $0x70] sm:$0xff] }
   0xb   :  { %165 = vmatpush.msra.mxu1 %v1740_v35  ;;  %v1775_v57 = vld [vmem:[%s2204_s4] sm:$0xff] }
   0xc   :  { %1362 = vrot.lane.b32.xlu0 %v1361_v13, %s1590_s26  ;;  %v144_v58 = vperm.slane %v1775_v57, 0  ;;  %v1787_v5 = vld [vmem:[%s2201_s1] sm:$0xff] }
   0xd   :  { %1372 = vrot.lane.b32.xlu1 %v1371_v14, %s1590_s26  ;;  %166 = vmatpush.msra.mxu1 %v1748_v39 }
   0xe   :  { %1382 = vrot.lane.b32.xlu2 %v1381_v17, %s1590_s26  ;;  %v1794_v17 = vld [vmem:[%s2201_s1 + $0x8] sm:$0xff]  ;;  %s1592_s1 = smov 32  }
   0xf   :  { %167 = vmatpush.msra.mxu1 %v1761_v54 }
  0x14   :  { %1387 = vrot.lane.b32.xlu0 %v1386_v22, %s1590_s26 }
  0x15   :  { %1392 = vrot.lane.b32.xlu1 %v1391_v23, %s1590_s26 }
  0x60   :  { %v1378_v30 = vpop.permute.xlu2 %1377 }
  0x61   :  { %v1379_v42 = vunpack.i.l.bf16 %v1378_v30  ;;  %v1380_v43 = vunpack.i.h.bf16 %v1378_v30 }
  0x68   :  { %v1383_v41 = vpop.permute.xlu2 %1382 }
  0x69   :  { %v1384_v44 = vunpack.i.l.bf16 %v1383_v41  ;;  %v1385_v46 = vunpack.i.h.bf16 %v1383_v41 }
  0x76   :  { %v1358_v24 = vpop.permute.xlu0 %1357 }
  0x77   :  { %v1359_v25 = vunpack.i.l.bf16 %v1358_v24  ;;  %v1368_v26 = vpop.permute.xlu1 %1367  ;;  %v1360_v27 = vunpack.i.h.bf16 %v1358_v24 }
  0x78   :  { %v1369_v33 = vunpack.i.l.bf16 %v1368_v26  ;;  %v1370_v36 = vunpack.i.h.bf16 %v1368_v26 }
  0x79   :  { %109 = vmatpush.msra.mxu0 %v1359_v25 }
  0x7b   :  { %110 = vmatpush.msra.mxu0 %v1360_v27 }
  0x7e   :  { %v1363_v28 = vpop.permute.xlu0 %1362 }
  0x7f   :  { %v1364_v29 = vunpack.i.l.bf16 %v1363_v28  ;;  %v1365_v31 = vunpack.i.h.bf16 %v1363_v28  ;;  %v1373_v32 = vpop.permute.xlu1 %1372 }
  0x80   :  { %v1374_v37 = vunpack.i.l.bf16 %v1373_v32  ;;  %v1375_v40 = vunpack.i.h.bf16 %v1373_v32 }
  0x81   :  { %111 = vmatpush.msra.mxu0 %v1364_v29 }
  0x83   :  { %112 = vmatpush.msra.mxu0 %v1365_v31 }
  0x85   :  { %113 = vmatpush.msra.mxu0 %v1369_v33 }
  0x86   :  { %v1388_v45 = vpop.permute.xlu0 %1387 }
  0x87   :  { %114 = vmatpush.msra.mxu0 %v1370_v36  ;;  %v1389_v47 = vunpack.i.l.bf16 %v1388_v45  ;;  %v1393_v48 = vpop.permute.xlu1 %1392  ;;  %v1390_v49 = vunpack.i.h.bf16 %v1388_v45 }
  0x88   :  { %v1394_v50 = vunpack.i.l.bf16 %v1393_v48  ;;  %v1395_v51 = vunpack.i.h.bf16 %v1393_v48 }
  0x89   :  { %115 = vmatpush.msra.mxu0 %v1374_v37 }
  0x8b   :  { %116 = vmatpush.msra.mxu0 %v1375_v40 }
  0x8d   :  { %117 = vmatpush.msra.mxu0 %v1379_v42 }
  0x8f   :  { %118 = vmatpush.msra.mxu0 %v1380_v43 }
  0x91   :  { %119 = vmatpush.msra.mxu0 %v1384_v44  ;;  %v1857_v44 = vld [vmem:[%s2202_s2 + $0x10] sm:$0xff] }
  0x93   :  { %120 = vmatpush.msra.mxu0 %v1385_v46 }
  0x95   :  { %121 = vmatpush.msra.mxu0 %v1389_v47  ;;  %v270_v47 = vperm.slane %v1775_v57, 1 }
  0x97   :  { %122 = vmatpush.msra.mxu0 %v1390_v49 }
  0x99   :  { %123 = vmatpush.msra.mxu0 %v1394_v50 }
  0x9b   :  { %124 = vmatpush.msra.mxu0 %v1395_v51 }
  0x9c   :  { %125 = vmatmul.f32.vlgmr.msra.gmra.mxu0 %v25_v52 }
  0xa4   :  { %128 = vmatmul.f32.gmra.mxu0 %v26_v53 }
 0x119   :  { %v1764_v55 = vpop.f32.mrf.mxu0 }
 0x11a   :  { %1310 = vmatmul.msk.f32.vlgmr.msra.gmra.mxu1 %vm145_vm0, %v1764_v55 }
 0x121   :  { %v1768_v56 = vpop.f32.mrf.mxu0 }
 0x122   :  { %1311 = vmatmul.msk.f32.gmra.mxu1 %vm145_vm0, %v1768_v56 }
 0x197   :  { %v169_v59 = vpop.f32.mrf.mxu1 }
 0x198   :  { %v170_v60 = vadd.f32 %v169_v59, %v144_v58  ;;  %v1593_v59 = vmov 32.0  }
 0x19a   :  { %177 = vrot.lane.b32.xlu0 %v170_v60, %s1591_s16 }
 0x19f   :  { %v172_v61 = vpop.f32.mrf.mxu1 }
 0x1a0   :  { %v173_v62 = vadd.f32 %v172_v61, %v144_v58 }
 0x1a2   :  { %179 = vrot.lane.b32.xlu2 %v173_v62, %s1591_s16  ;;  %v1396_v25 = vpack.i.bf16 %v170_v60, %v173_v62 }
 0x1fc   :  { %v180_v63 = vpop.permute.xlu2 %179 }
 0x1fd   :  { %1312 = vmatpush.xpose.msk.msra.mxu2 %vm145_vm0, %v180_v63  ;;  %v541_v63 = vperm.slane %v1775_v57, 4 }
 0x20c   :  { %v178_v2 = vpop.permute.xlu0 %177 }
 0x20d   :  { %1313 = vmatpush.xpose.msk.msra.mxu2 %vm145_vm0, %v178_v2 }
 0x210   :  { %1314 = vmatmul.msk.f32.vlgmr.msra.gmra.mxu2 %vm145_vm0, %v170_v60 }
 0x218   :  { %1315 = vmatmul.msk.f32.gmra.mxu2 %vm145_vm0, %v173_v62 }
 0x293   :  { %v206_v12 = vpop.f32.mrf.mxu2 }
 0x294   :  { %v207_v13 = vadd.f32 %v206_v12, %v1787_v5 }
 0x296   :  { %v213_v14 = vsel %vm212_vm1, %v207_v13, -inf }
 0x297   :  { %214 = vmax.xlane.f32.xlu1 %v213_v14 }
 0x29b   :  { %v209_v22 = vpop.f32.mrf.mxu2 }
 0x29c   :  { %v210_v23 = vadd.f32 %v209_v22, %v1794_v17 }
 0x29e   :  { %v216_v24 = vsel %vm212_vm1, %v210_v23, -inf }
 0x29f   :  { %217 = vmax.xlane.f32.xlu2 %v216_v24 }
 0x2b7   :  { %1397 = vrot.lane.b32.xlu2 %v1396_v25, %s1590_s26 }
 0x30a   :  { %v215_v26 = vpop.xlane.xlu1 %214 }
 0x30b   :  { %v219_v27 = vsub.f32 %v207_v13, %v215_v26 }
 0x30d   :  { %v221_v28 = vmul.f32 1.442695, %v219_v27 }
 0x30f   :  { %1492 = vpow2.f32 %v221_v28 }
 0x312   :  { %v218_v29 = vpop.xlane.xlu2 %217 }
 0x313   :  { %v220_v30 = vsub.f32 %v210_v23, %v218_v29 }
 0x315   :  { %v1493_v31 = vpop.eup %1492  ;;  %v223_v32 = vmul.f32 1.442695, %v220_v30 }
 0x316   :  { %v225_v33 = vsel %vm212_vm1, %v1493_v31, 0.0 }
 0x317   :  { %1494 = vpow2.f32 %v223_v32  ;;  %226 = vadd.xlane.f32.xlu0 %v225_v33  ;;  %v378_v33 = vld [vmem:[%s2202_s2 + $0x98] sm:$0xff] }
 0x318   :  { %398 = vmatpush.msrb.mxu1 %v378_v33  ;;  %v411_v33 = vperm.slane %v1775_v57, 3 }
 0x31a   :  { %v1398_v36 = vpop.permute.xlu2 %1397 }
 0x31b   :  { %v1399_v37 = vunpack.i.l.bf16 %v1398_v36  ;;  %v1400_v41 = vunpack.i.h.bf16 %v1398_v36  ;;  %v377_v36 = vld [vmem:[%s2202_s2 + $0x68] sm:$0xff] }
 0x31c   :  { %399 = vmatpush.msrb.mxu1 %v377_v36 }
 0x31d   :  { %v1495_v40 = vpop.eup %1494  ;;  %261 = vmatpush.msrb.mxu2 %v1399_v37  ;;  %v376_v37 = vld [vmem:[%s2202_s2 + $0x38] sm:$0xff] }
 0x31e   :  { %v228_v42 = vsel %vm212_vm1, %v1495_v40, 0.0  ;;  %400 = vmatpush.msrb.mxu1 %v376_v37 }
 0x31f   :  { %262 = vmatpush.msrb.mxu2 %v1400_v41  ;;  %229 = vadd.xlane.f32.xlu1 %v228_v42 }
 0x321   :  { %412 = vmatpush.msra.mxu2 %v1636_v1 }
 0x323   :  { %413 = vmatpush.msra.mxu2 %v1631_v0  ;;  %v1406_v0 = vpack.i.bf16 %v1761_v54, %v1748_v39 }
 0x325   :  { %414 = vmatpush.msra.mxu2 %v1661_v7 }
 0x327   :  { %415 = vmatpush.msra.mxu2 %v1656_v6 }
 0x329   :  { %416 = vmatpush.msra.mxu2 %v1648_v4 }
 0x32b   :  { %417 = vmatpush.msra.mxu2 %v1643_v3  ;;  %1402 = vrot.lane.b32.xlu0 %v1401_v38, %s1592_s1  ;;  %v1848_v38 = vld [vmem:[%s2202_s2 + $0x40] sm:$0xff] }
 0x32d   :  { %418 = vmatpush.msra.mxu2 %v1682_v11 }
 0x32f   :  { %419 = vmatpush.msra.mxu2 %v1667_v8 }
 0x331   :  { %420 = vmatpush.msra.mxu2 %v1677_v10 }
 0x333   :  { %421 = vmatpush.msra.mxu2 %v1672_v9 }
 0x335   :  { %422 = vmatpush.msra.mxu2 %v1699_v16 }
 0x337   :  { %423 = vmatpush.msra.mxu2 %v1694_v15 }
 0x338   :  { %1407 = vrot.lane.b32.xlu1 %v1406_v0, %s1592_s1 }
 0x339   :  { %424 = vmatpush.msra.mxu2 %v1713_v19  ;;  %v27_v19 = vld [vmem:[%s2200_s0 + $0x10] sm:$0xff] }
 0x33a   :  { %131 = vmatmul.f32.gmra.mxu0 %v27_v19 }
 0x33b   :  { %425 = vmatpush.msra.mxu2 %v1708_v18 }
 0x33d   :  { %426 = vmatpush.msra.mxu2 %v1723_v21  ;;  %v1835_v21 = vld [vmem:[%s2202_s2 + $0xa0] sm:$0xff] }
 0x33e   :  { %v1416_v35 = vpack.i.bf16 %v1840_v34, %v1835_v21 }
 0x33f   :  { %427 = vmatpush.msra.mxu2 %v1718_v20  ;;  %v28_v20 = vld [vmem:[%s2200_s0 + $0x18] sm:$0xff]  ;;  %s1298_s0 = sshll.u32 %s2205_s5, 4  ;;  %s1299_s0 = int_to_ptr.hbm [resolvable:$true] %s1298_s0 }
 0x342   :  { %134 = vmatmul.f32.gmra.mxu0 %v28_v20 }
 0x38a   :  { %v227_v1 = vpop.xlane.xlu0 %226 }
 0x38b   :  { %1496 = vrcp.f32 %v227_v1 }
 0x391   :  { %v1497_v3 = vpop.eup %1496 }
 0x392   :  { %v230_v4 = vpop.xlane.xlu1 %229  ;;  %v233_v6 = vmul.f32 %v1497_v3, %v1493_v31 }
 0x393   :  { %1498 = vrcp.f32 %v230_v4 }
 0x394   :  { %1316 = vmatmul.msk.f32.vlgmr.msrb.gmra.mxu2 %vm212_vm1, %v233_v6  ;;  %1500 = vrcp.f32 %v1593_v59 }
 0x399   :  { %v1499_v7 = vpop.eup %1498 }
 0x39a   :  { %v234_v8 = vmul.f32 %v1499_v7, %v1495_v40  ;;  %v1501_v61 = vpop.eup %1500  ;;  %v375_v40 = vld [vmem:[%s2202_s2 + $0x8] sm:$0xff] }
 0x39b   :  { %v325_v62 = vmul.f32 32.0, %v1501_v61  ;;  %vm329_vm2 = vweird.f32 %v1501_v61  ;;  %401 = vmatpush.msrb.mxu1 %v375_v40 }
 0x39c   :  { %1317 = vmatmul.msk.f32.gmra.mxu2 %vm212_vm1, %v234_v8 }
 0x39d   :  { %v1403_v9 = vpop.permute.xlu0 %1402  ;;  %v326_v2 = vsub.f32 1.0, %v325_v62  ;;  %v379_v62 = vperm.slane %v1775_v57, 2 }
 0x39e   :  { %v1404_v10 = vunpack.i.l.bf16 %v1403_v9  ;;  %v1405_v11 = vunpack.i.h.bf16 %v1403_v9 }
 0x39f   :  { %v327_v13 = vmul.f32 %v1501_v61, %v326_v2 }
 0x3a0   :  { %305 = vmatpush.msra.mxu3 %v1404_v10 }
 0x3a1   :  { %v328_v14 = vadd.f32 %v1501_v61, %v327_v13 }
 0x3a2   :  { %306 = vmatpush.msra.mxu3 %v1405_v11 }
 0x3aa   :  { %v1408_v15 = vpop.permute.xlu1 %1407 }
 0x3ab   :  { %v1409_v16 = vunpack.i.l.bf16 %v1408_v15  ;;  %v1410_v18 = vunpack.i.h.bf16 %v1408_v15 }
 0x3ad   :  { %307 = vmatpush.msra.mxu3 %v1409_v16  ;;  %v1909_v16 = vld [vmem:[%s2204_s4 + $0x8] sm:$0xff] }
 0x3af   :  { %308 = vmatpush.msra.mxu3 %v1410_v18 }
 0x3b1   :  { %560 = vmatpush.msrb.mxu3 %v1835_v21 }
 0x3b3   :  { %561 = vmatpush.msrb.mxu3 %v1840_v34 }
 0x3b5   :  { %562 = vmatpush.msrb.mxu3 %v1848_v38 }
 0x3b7   :  { %563 = vmatpush.msrb.mxu3 %v1857_v44  ;;  %v1860_v45 = vpop.f32.mrf.mxu0 }
 0x3bf   :  { %v1864_v46 = vpop.f32.mrf.mxu0 }
 0x417   :  { %v264_v39 = vpop.f32.mrf.mxu2 }
 0x418   :  { %1318 = vmatmul.msk.f32.vlgmr.msra.gmra.mxu3 %vm145_vm0, %v264_v39  ;;  %v369_v39 = vperm.slane %v1909_v16, 3 }
 0x41f   :  { %v267_v43 = vpop.f32.mrf.mxu2 }
 0x420   :  { %1319 = vmatmul.msk.f32.gmra.mxu3 %vm145_vm0, %v267_v43 }
 0x428   :  { %1322 = vmatmul.msk.f32.vlgmr.msrb.gmra.mxu3 %vm145_vm0, %v1860_v45 }
 0x430   :  { %1323 = vmatmul.msk.f32.gmra.mxu3 %vm145_vm0, %v1864_v46 }
 0x49b   :  { %v310_v48 = vpop.f32.mrf.mxu3 }
 0x49c   :  { %v311_v49 = vadd.f32 %v310_v48, %v270_v47 }
 0x49e   :  { %v316_v50 = vadd.f32 %v311_v49, %v1764_v55  ;;  %v372_v49 = vperm.slane %v1909_v16, 4 }
 0x4a0   :  { %v318_v51 = vsel %vm145_vm0, %v316_v50, 0.0 }
 0x4a1   :  { %319 = vadd.xlane.f32.xlu2 %v318_v51 }
 0x4a3   :  { %v313_v52 = vpop.f32.mrf.mxu3 }
 0x4a4   :  { %v314_v53 = vadd.f32 %v313_v52, %v270_v47 }
 0x4a6   :  { %v317_v54 = vadd.f32 %v314_v53, %v1768_v56  ;;  %v1878_v56 = vsel %vm329_vm2, %v1501_v61, %v328_v14 }
 0x4a8   :  { %v321_v58 = vsel %vm145_vm0, %v317_v54, 0.0 }
 0x4a9   :  { %322 = vadd.xlane.f32.xlu0 %v321_v58 }
 0x4ab   :  { %v565_v60 = vpop.f32.mrf.mxu3 }
 0x4ac   :  { %v1884_v32 = vadd.f32 %v565_v60, %v541_v63 }
 0x4b3   :  { %v568_v12 = vpop.f32.mrf.mxu3 }
 0x4b4   :  { %v1874_v55 = vadd.f32 %v568_v12, %v541_v63 }
 0x4bd   :  { %575 = vrot.lane.b32.xlu0 %v1874_v55, %s1591_s16 }
 0x4c5   :  { %581 = vrot.lane.b32.xlu0 %v1794_v17, %s1594_s8 }
 0x514   :  { %v320_v22 = vpop.xlane.xlu2 %319 }
 0x515   :  { %v331_v23 = vmul.f32 %v1878_v56, %v320_v22 }
 0x517   :  { %v333_v24 = vsub.f32 %v316_v50, %v331_v23 }
 0x519   :  { %v335_v25 = vmul.f32 %v333_v24, %v333_v24 }
 0x51b   :  { %v337_v26 = vsel %vm145_vm0, %v335_v25, 0.0 }
 0x51c   :  { %v323_v27 = vpop.xlane.xlu0 %322  ;;  %338 = vadd.xlane.f32.xlu1 %v337_v26 }
 0x51d   :  { %v332_v28 = vmul.f32 %v1878_v56, %v323_v27 }
 0x51f   :  { %v334_v29 = vsub.f32 %v317_v54, %v332_v28 }
 0x521   :  { %v336_v30 = vmul.f32 %v334_v29, %v334_v29 }
 0x523   :  { %v340_v31 = vsel %vm145_vm0, %v336_v30, 0.0 }
 0x524   :  { %341 = vadd.xlane.f32.xlu2 %v340_v31  ;;  %v1411_v31 = vpack.i.bf16 %v1884_v32, %v1874_v55 }
 0x52f   :  { %v576_v41 = vpop.permute.xlu0 %575 }
 0x530   :  { %1324 = vmatpush.xpose.msk.msra.mxu1 %vm145_vm0, %v576_v41 }
 0x535   :  { %579 = vrot.lane.b32.xlu1 %v1787_v5, %s1594_s8  ;;  %s1597_s8 = smov 8  }
 0x537   :  { %v582_v27 = vpop.permute.xlu0 %581 }
 0x53c   :  { %573 = vrot.lane.b32.xlu2 %v1884_v32, %s1591_s16 }
 0x58f   :  { %v339_v42 = vpop.xlane.xlu1 %338 }
 0x590   :  { %v343_v0 = vmul.f32 %v339_v42, %v1878_v56 }
 0x592   :  { %v345_v1 = vadd.f32 1e-05, %v343_v0 }
 0x594   :  { %1502 = vrsqrt.f32 %v345_v1  ;;  %vm353_vm4 = vweird.f32 %v345_v1 }
 0x597   :  { %v342_v3 = vpop.xlane.xlu2 %341 }
 0x598   :  { %v344_v4 = vmul.f32 %v342_v3, %v1878_v56 }
 0x59a   :  { %v1503_v6 = vpop.eup %1502  ;;  %v346_v7 = vadd.f32 1e-05, %v344_v4 }
 0x59b   :  { %v348_v8 = vmul.f32 %v1503_v6, %v345_v1  ;;  %vm354_vm3 = vweird.f32 %v1503_v6 }
 0x59c   :  { %1504 = vrsqrt.f32 %v346_v7  ;;  %vm355_vm5 = vmor %vm353_vm4, %vm354_vm3  ;;  %vm363_vm7 = vweird.f32 %v346_v7 }
 0x59d   :  { %v349_v9 = vmul.f32 %v1503_v6, %v348_v8 }
 0x59f   :  { %v350_v10 = vmul.f32 0.5, %v349_v9  ;;  %v574_v11 = vpop.permute.xlu2 %573 }
 0x5a0   :  { %1325 = vmatpush.xpose.msk.msra.mxu1 %vm145_vm0, %v574_v11 }
 0x5a1   :  { %v351_v15 = vsub.f32 1.5, %v350_v10 }
 0x5a2   :  { %v1505_v18 = vpop.eup %1504 }
 0x5a3   :  { %v352_v19 = vmul.f32 %v1503_v6, %v351_v15  ;;  %v358_v20 = vmul.f32 %v1505_v18, %v346_v7  ;;  %vm364_vm6 = vweird.f32 %v1505_v18  ;;  %v1421_v15 = vpack.i.bf16 %v1857_v44, %v1848_v38 }
 0x5a4   :  { %vm365_vm8 = vmor %vm363_vm7, %vm364_vm6 }
 0x5a5   :  { %v356_v43 = vsel %vm355_vm5, %v1503_v6, %v352_v19  ;;  %v359_v47 = vmul.f32 %v1505_v18, %v358_v20 }
 0x5a6   :  { %v367_v48 = vmul.f32 %v356_v43, %v333_v24 }
 0x5a7   :  { %v360_v50 = vmul.f32 0.5, %v359_v47  ;;  %v580_v23 = vpop.permute.xlu1 %579 }
 0x5a8   :  { %v370_v51 = vmul.f32 %v369_v39, %v367_v48 }
 0x5a9   :  { %v361_v52 = vsub.f32 1.5, %v360_v50 }
 0x5aa   :  { %v373_v53 = vadd.f32 %v372_v49, %v370_v51 }
 0x5ab   :  { %v362_v54 = vmul.f32 %v1505_v18, %v361_v52 }
 0x5ac   :  { %1320 = vmatmul.msk.f32.vlgmr.msrb.gmra.mxu1 %vm145_vm0, %v373_v53 }
 0x5ad   :  { %v366_v58 = vsel %vm365_vm8, %v1505_v18, %v362_v54 }
 0x5ae   :  { %v368_v59 = vmul.f32 %v366_v58, %v334_v29 }
 0x5b0   :  { %v371_v60 = vmul.f32 %v369_v39, %v368_v59 }
 0x5b2   :  { %v374_v61 = vadd.f32 %v372_v49, %v371_v60 }
 0x5b4   :  { %1321 = vmatmul.msk.f32.gmra.mxu1 %vm145_vm0, %v374_v61 }
 0x5bc   :  { %1326 = vmatmul.msk.f32.vlgmr.msra.gmra.mxu1 %vm145_vm0, %v1884_v32 }
 0x5c4   :  { %1327 = vmatmul.msk.f32.gmra.mxu1 %vm145_vm0, %v1874_v55 }
 0x629   :  { %v403_v63 = vpop.f32.mrf.mxu1 }
 0x62a   :  { %v404_v2 = vadd.f32 %v403_v63, %v379_v62 }
 0x62c   :  { %v409_v12 = vmax.f32 %v404_v2, 0.0 }
 0x62e   :  { %428 = vmatmul.f32.vlgmr.msra.gmra.mxu2 %v409_v12 }
 0x631   :  { %v406_v13 = vpop.f32.mrf.mxu1 }
 0x632   :  { %v407_v14 = vadd.f32 %v406_v13, %v379_v62 }
 0x634   :  { %v410_v22 = vmax.f32 %v407_v14, 0.0 }
 0x636   :  { %431 = vmatmul.f32.gmra.mxu2 %v410_v22 }
 0x639   :  { %v610_v24 = vpop.f32.mrf.mxu1 }
 0x63a   :  { %v611_v25 = vadd.f32 %v610_v24, %v580_v23 }
 0x63c   :  { %v616_v26 = vsel %vm212_vm1, %v611_v25, -inf }
 0x63d   :  { %617 = vmax.xlane.f32.xlu2 %v616_v26 }
 0x641   :  { %v613_v28 = vpop.f32.mrf.mxu1 }
 0x642   :  { %v614_v29 = vadd.f32 %v613_v28, %v582_v27 }
 0x644   :  { %v619_v30 = vsel %vm212_vm1, %v614_v29, -inf }
 0x645   :  { %620 = vmax.xlane.f32.xlu0 %v619_v30 }
 0x655   :  { %1412 = vrot.lane.b32.xlu2 %v1411_v31, %s1590_s26 }
 0x6b0   :  { %v618_v36 = vpop.xlane.xlu2 %617 }
 0x6b1   :  { %v622_v37 = vsub.f32 %v611_v25, %v618_v36  ;;  %v429_v40 = vpop.f32.mrf.mxu2 }
 0x6b2   :  { %v430_v41 = vadd.f32 %v429_v40, %v411_v33 }
 0x6b3   :  { %v624_v42 = vmul.f32 1.442695, %v622_v37 }
 0x6b4   :  { %v435_v0 = vadd.f32 %v430_v41, %v373_v53 }
 0x6b5   :  { %1506 = vpow2.f32 %v624_v42 }
 0x6b6   :  { %v437_v1 = vsel %vm145_vm0, %v435_v0, 0.0 }
 0x6b7   :  { %438 = vadd.xlane.f32.xlu2 %v437_v1 }
 0x6b8   :  { %v621_v3 = vpop.xlane.xlu0 %620  ;;  %v1413_v4 = vpop.permute.xlu2 %1412 }
 0x6b9   :  { %v623_v6 = vsub.f32 %v614_v29, %v621_v3  ;;  %v1414_v7 = vunpack.i.l.bf16 %v1413_v4  ;;  %v1415_v32 = vunpack.i.h.bf16 %v1413_v4  ;;  %v432_v18 = vpop.f32.mrf.mxu2  ;;  %v481_v29 = vperm.slane %v1909_v16, 5 }
 0x6ba   :  { %v433_v19 = vadd.f32 %v432_v18, %v411_v33  ;;  %v484_v33 = vperm.slane %v1909_v16, 6 }
 0x6bb   :  { %v1507_v8 = vpop.eup %1506  ;;  %v626_v55 = vmul.f32 1.442695, %v623_v6  ;;  %664 = vmatpush.msra.mxu3 %v1414_v7 }
 0x6bc   :  { %v628_v9 = vsel %vm212_vm1, %v1507_v8, 0.0  ;;  %v436_v20 = vadd.f32 %v433_v19, %v374_v61 }
 0x6bd   :  { %1508 = vpow2.f32 %v626_v55  ;;  %629 = vadd.xlane.f32.xlu1 %v628_v9  ;;  %665 = vmatpush.msra.mxu3 %v1415_v32 }
 0x6be   :  { %v440_v39 = vsel %vm145_vm0, %v436_v20, 0.0 }
 0x6c3   :  { %v1509_v10 = vpop.eup %1508 }
 0x6c4   :  { %v631_v11 = vsel %vm212_vm1, %v1509_v10, 0.0 }
 0x6c5   :  { %632 = vadd.xlane.f32.xlu0 %v631_v11 }
 0x6d6   :  { %1417 = vrot.lane.b32.xlu1 %v1416_v35, %s1592_s1 }
 0x6d9   :  { %1422 = vrot.lane.b32.xlu0 %v1421_v15, %s1592_s1 }
 0x700   :  { %441 = vadd.xlane.f32.xlu1 %v440_v39  ;;  %v673_v39 = vperm.slane %v1775_v57, 5 }
 0x72a   :  { %v439_v43 = vpop.xlane.xlu2 %438 }
 0x72b   :  { %v443_v47 = vmul.f32 %v439_v43, %v1878_v56 }
 0x72d   :  { %v445_v48 = vsub.f32 %v435_v0, %v443_v47 }
 0x72f   :  { %v447_v49 = vmul.f32 %v445_v48, %v445_v48 }
 0x730   :  { %v630_v50 = vpop.xlane.xlu1 %629 }
 0x731   :  { %1510 = vrcp.f32 %v630_v50  ;;  %v449_v38 = vsel %vm145_vm0, %v447_v49, 0.0 }
 0x732   :  { %450 = vadd.xlane.f32.xlu0 %v449_v38 }
 0x737   :  { %v1511_v21 = vpop.eup %1510 }
 0x738   :  { %v636_v34 = vmul.f32 %v1511_v21, %v1507_v8  ;;  %v633_v35 = vpop.xlane.xlu0 %632 }
 0x739   :  { %1512 = vrcp.f32 %v633_v35 }
 0x73a   :  { %1328 = vmatmul.msk.f32.vlgmr.msra.gmra.mxu3 %vm212_vm1, %v636_v34 }
 0x73f   :  { %v1513_v44 = vpop.eup %1512 }
 0x740   :  { %v637_v51 = vmul.f32 %v1513_v44, %v1509_v10 }
 0x742   :  { %1329 = vmatmul.msk.f32.gmra.mxu3 %vm212_vm1, %v637_v51 }
 0x748   :  { %v1418_v52 = vpop.permute.xlu1 %1417 }
 0x749   :  { %v1420_v53 = vunpack.i.h.bf16 %v1418_v52  ;;  %v1419_v54 = vunpack.i.l.bf16 %v1418_v52 }
 0x74b   :  { %708 = vmatpush.msrb.mxu1 %v1419_v54  ;;  %v1423_v58 = vpop.permute.xlu0 %1422 }
 0x74c   :  { %v1425_v59 = vunpack.i.h.bf16 %v1423_v58  ;;  %v1424_v60 = vunpack.i.l.bf16 %v1423_v58 }
 0x74d   :  { %709 = vmatpush.msrb.mxu1 %v1420_v53 }
 0x74f   :  { %710 = vmatpush.msrb.mxu1 %v1424_v60 }
 0x751   :  { %711 = vmatpush.msrb.mxu1 %v1425_v59 }
 0x773   :  { %v442_v61 = vpop.xlane.xlu1 %441 }
 0x774   :  { %v444_v62 = vmul.f32 %v442_v61, %v1878_v56  ;;  %v774_v61 = vld [vmem:[%s2202_s2 + $0xa8] sm:$0xff] }
 0x775   :  { %794 = vmatpush.msrb.mxu2 %v774_v61 }
 0x776   :  { %v446_v63 = vsub.f32 %v436_v20, %v444_v62 }
 0x778   :  { %v448_v2 = vmul.f32 %v446_v63, %v446_v63 }
 0x77a   :  { %v452_v12 = vsel %vm145_vm0, %v448_v2, 0.0 }
 0x77b   :  { %453 = vadd.xlane.f32.xlu2 %v452_v12  ;;  %v772_v12 = vld [vmem:[%s2202_s2 + $0x48] sm:$0xff] }
 0x7a5   :  { %v451_v13 = vpop.xlane.xlu0 %450 }
 0x7a6   :  { %v455_v14 = vmul.f32 %v451_v13, %v1878_v56 }
 0x7a8   :  { %v457_v22 = vadd.f32 1e-05, %v455_v14  ;;  %v771_v14 = vld [vmem:[%s2202_s2 + $0x18] sm:$0xff] }
 0x7aa   :  { %1514 = vrsqrt.f32 %v457_v22  ;;  %vm465_vm10 = vweird.f32 %v457_v22 }
 0x7b0   :  { %v1515_v23 = vpop.eup %1514 }
 0x7b1   :  { %v460_v24 = vmul.f32 %v1515_v23, %v457_v22  ;;  %vm466_vm9 = vweird.f32 %v1515_v23 }
 0x7b2   :  { %vm467_vm11 = vmor %vm465_vm10, %vm466_vm9 }
 0x7b3   :  { %v461_v25 = vmul.f32 %v1515_v23, %v460_v24 }
 0x7b5   :  { %v462_v26 = vmul.f32 0.5, %v461_v25 }
 0x7b7   :  { %v463_v27 = vsub.f32 1.5, %v462_v26 }
 0x7b9   :  { %v464_v28 = vmul.f32 %v1515_v23, %v463_v27  ;;  %v1998_v27 = vpack.i.bf16 %v771_v14, %v772_v12 }
 0x7bb   :  { %v468_v30 = vsel %vm467_vm11, %v1515_v23, %v464_v28 }
 0x7bc   :  { %v479_v31 = vmul.f32 %v468_v30, %v445_v48 }
 0x7bd   :  { %v667_v36 = vpop.f32.mrf.mxu3 }
 0x7be   :  { %1330 = vmatmul.msk.f32.vlgmr.msrb.gmra.mxu1 %vm145_vm0, %v667_v36  ;;  %v482_v37 = vmul.f32 %v481_v29, %v479_v31 }
 0x7c0   :  { %v485_v40 = vadd.f32 %v484_v33, %v482_v37 }
 0x7c2   :  { %v487_v41 = vsel %vm145_vm0, %v485_v40, 0.0 }
 0x7c3   :  { %488 = vadd.xlane.f32.xlu1 %v487_v41 }
 0x7c5   :  { %v670_v42 = vpop.f32.mrf.mxu3 }
 0x7c6   :  { %1331 = vmatmul.msk.f32.gmra.mxu1 %vm145_vm0, %v670_v42 }
 0x7ee   :  { %v454_v0 = vpop.xlane.xlu2 %453 }
 0x7ef   :  { %v456_v1 = vmul.f32 %v454_v0, %v1878_v56 }
 0x7f1   :  { %v458_v3 = vadd.f32 1e-05, %v456_v1 }
 0x7f3   :  { %1516 = vrsqrt.f32 %v458_v3  ;;  %vm475_vm13 = vweird.f32 %v458_v3 }
 0x7f9   :  { %v1517_v4 = vpop.eup %1516 }
 0x7fa   :  { %v470_v6 = vmul.f32 %v1517_v4, %v458_v3  ;;  %vm476_vm12 = vweird.f32 %v1517_v4 }
 0x7fb   :  { %vm477_vm14 = vmor %vm475_vm13, %vm476_vm12 }
 0x7fc   :  { %v471_v7 = vmul.f32 %v1517_v4, %v470_v6 }
 0x7fe   :  { %v472_v8 = vmul.f32 0.5, %v471_v7 }
 0x800   :  { %v473_v55 = vsub.f32 1.5, %v472_v8 }
 0x802   :  { %v474_v32 = vmul.f32 %v1517_v4, %v473_v55  ;;  %v2006_v55 = vperm.slane %v1775_v57, 6 }
 0x804   :  { %v478_v9 = vsel %vm477_vm14, %v1517_v4, %v474_v32 }
 0x805   :  { %v480_v10 = vmul.f32 %v478_v9, %v446_v63 }
 0x807   :  { %v483_v11 = vmul.f32 %v481_v29, %v480_v10 }
 0x809   :  { %v486_v15 = vadd.f32 %v484_v33, %v483_v11 }
 0x80b   :  { %v490_v18 = vsel %vm145_vm0, %v486_v15, 0.0 }
 0x80c   :  { %491 = vadd.xlane.f32.xlu0 %v490_v18 }
 0x836   :  { %v489_v19 = vpop.xlane.xlu1 %488 }
 0x837   :  { %v493_v20 = vmul.f32 %v489_v19, %v1878_v56 }
 0x839   :  { %v1953_v43 = vsub.f32 %v485_v40, %v493_v20 }
 0x83b   :  { %v713_v47 = vpop.f32.mrf.mxu1  ;;  %v497_v48 = vmul.f32 %v1953_v43, %v1953_v43 }
 0x83c   :  { %v714_v49 = vadd.f32 %v713_v47, %v673_v39 }
 0x83d   :  { %v499_v50 = vsel %vm145_vm0, %v497_v48, 0.0 }
 0x83e   :  { %500 = vadd.xlane.f32.xlu0 %v499_v50  ;;  %v719_v38 = vadd.f32 %v714_v49, %v1860_v45 }
 0x840   :  { %v721_v21 = vsel %vm145_vm0, %v719_v38, 0.0 }
 0x841   :  { %722 = vadd.xlane.f32.xlu2 %v721_v21  ;;  %v531_v21 = vperm.slane %v1909_v16, 7 }
 0x843   :  { %v716_v34 = vpop.f32.mrf.mxu1 }
 0x844   :  { %v717_v35 = vadd.f32 %v716_v34, %v673_v39 }
 0x846   :  { %v720_v44 = vadd.f32 %v717_v35, %v1864_v46  ;;  %v773_v46 = vld [vmem:[%s2202_s2 + $0x78] sm:$0xff]  ;;  %v2018_v35 = vld [vmem:[%s2204_s4 + $0x10] sm:$0xff] }
 0x847   :  { %v1975_v62 = vpack.i.bf16 %v773_v46, %v774_v61  ;;  %795 = vmatpush.msrb.mxu2 %v773_v46 }
 0x848   :  { %v724_v51 = vsel %vm145_vm0, %v720_v44, 0.0 }
 0x849   :  { %725 = vadd.xlane.f32.xlu1 %v724_v51  ;;  %796 = vmatpush.msrb.mxu2 %v772_v12 }
 0x84b   :  { %797 = vmatpush.msrb.mxu2 %v771_v14 }
 0x87f   :  { %v492_v52 = vpop.xlane.xlu0 %491 }
 0x880   :  { %v494_v53 = vmul.f32 %v492_v52, %v1878_v56 }
 0x882   :  { %v1963_v54 = vsub.f32 %v486_v15, %v494_v53 }
 0x884   :  { %v498_v58 = vmul.f32 %v1963_v54, %v1963_v54 }
 0x886   :  { %v502_v45 = vsel %vm145_vm0, %v498_v58, 0.0 }
 0x887   :  { %503 = vadd.xlane.f32.xlu2 %v502_v45 }
 0x89f   :  { %1427 = vrot.lane.b32.xlu2 %v1975_v62, %s1591_s16 }
 0x8a7   :  { %854 = vrot.lane.b32.xlu2 %v1787_v5, %s1591_s16 }
 0x8b1   :  { %v501_v28 = vpop.xlane.xlu0 %500 }
 0x8b2   :  { %v505_v30 = vmul.f32 %v501_v28, %v1878_v56 }
 0x8b4   :  { %v723_v59 = vpop.xlane.xlu2 %722  ;;  %v507_v31 = vadd.f32 1e-05, %v505_v30 }
 0x8b5   :  { %v727_v60 = vmul.f32 %v723_v59, %v1878_v56 }
 0x8b6   :  { %1518 = vrsqrt.f32 %v507_v31  ;;  %vm515_vm2 = vweird.f32 %v507_v31 }
 0x8b7   :  { %v1977_v63 = vsub.f32 %v719_v38, %v727_v60 }
 0x8b9   :  { %v731_v2 = vmul.f32 %v1977_v63, %v1977_v63 }
 0x8bb   :  { %v733_v13 = vsel %vm145_vm0, %v731_v2, 0.0  ;;  %v534_v2 = vperm.slane %v2018_v35, 0 }
 0x8bc   :  { %734 = vadd.xlane.f32.xlu1 %v733_v13  ;;  %v726_v22 = vpop.xlane.xlu1 %725  ;;  %v1519_v41 = vpop.eup %1518 }
 0x8bd   :  { %v728_v23 = vmul.f32 %v726_v22, %v1878_v56  ;;  %v510_v42 = vmul.f32 %v1519_v41, %v507_v31  ;;  %vm516_vm15 = vweird.f32 %v1519_v41 }
 0x8be   :  { %vm517_vm3 = vmor %vm515_vm2, %vm516_vm15 }
 0x8bf   :  { %v1991_v24 = vsub.f32 %v720_v44, %v728_v23  ;;  %v511_v1 = vmul.f32 %v1519_v41, %v510_v42 }
 0x8c1   :  { %v732_v25 = vmul.f32 %v1991_v24, %v1991_v24  ;;  %v512_v7 = vmul.f32 0.5, %v511_v1 }
 0x8c3   :  { %v736_v26 = vsel %vm145_vm0, %v732_v25, 0.0  ;;  %v513_v9 = vsub.f32 1.5, %v512_v7 }
 0x8c4   :  { %737 = vadd.xlane.f32.xlu0 %v736_v26 }
 0x8c5   :  { %v514_v20 = vmul.f32 %v1519_v41, %v513_v9 }
 0x8c7   :  { %v518_v48 = vsel %vm517_vm3, %v1519_v41, %v514_v20 }
 0x8c8   :  { %v529_v34 = vmul.f32 %v518_v48, %v1953_v43  ;;  %v768_v43 = vperm.slane %v2018_v35, 2 }
 0x8ca   :  { %v532_v61 = vmul.f32 %v531_v21, %v529_v34 }
 0x8cc   :  { %v535_v26 = vadd.f32 %v534_v2, %v532_v61 }
 0x8d5   :  { %1432 = vrot.lane.b32.xlu1 %v1998_v27, %s1591_s16 }
 0x8d8   :  { %822 = vrot.lane.b32.xlu0 %v2006_v55, %s1591_s16 }
 0x8e0   :  { %856 = vrot.lane.b32.xlu0 %v1794_v17, %s1591_s16  ;;  %v765_v17 = vperm.slane %v2018_v35, 1 }
 0x8fa   :  { %v504_v29 = vpop.xlane.xlu2 %503 }
 0x8fb   :  { %v506_v5 = vmul.f32 %v504_v29, %v1878_v56 }
 0x8fd   :  { %v508_v40 = vadd.f32 1e-05, %v506_v5 }
 0x8ff   :  { %1520 = vrsqrt.f32 %v508_v40  ;;  %vm525_vm8 = vweird.f32 %v508_v40 }
 0x902   :  { %v1428_v33 = vpop.permute.xlu2 %1427 }
 0x903   :  { %v1429_v36 = vunpack.i.l.bf16 %v1428_v33  ;;  %v1430_v37 = vunpack.i.h.bf16 %v1428_v33 }
 0x905   :  { %843 = vmatpush.msrb.mxu0 %v1429_v36  ;;  %v1521_v4 = vpop.eup %1520 }
 0x906   :  { %v520_v8 = vmul.f32 %v1521_v4, %v508_v40  ;;  %vm526_vm6 = vweird.f32 %v1521_v4 }
 0x907   :  { %844 = vmatpush.msrb.mxu0 %v1430_v37  ;;  %vm2023_vm9 = vmor %vm525_vm8, %vm526_vm6 }
 0x908   :  { %v521_v10 = vmul.f32 %v1521_v4, %v520_v8 }
 0x90a   :  { %v522_v39 = vmul.f32 0.5, %v521_v10 }
 0x90c   :  { %v523_v49 = vsub.f32 1.5, %v522_v39 }
 0x90e   :  { %v524_v52 = vmul.f32 %v1521_v4, %v523_v49 }
 0x910   :  { %v528_v12 = vsel %vm2023_vm9, %v1521_v4, %v524_v52 }
 0x911   :  { %v530_v28 = vmul.f32 %v528_v12, %v1963_v54 }
 0x913   :  { %v533_v31 = vmul.f32 %v531_v21, %v530_v28 }
 0x915   :  { %v536_v5 = vadd.f32 %v534_v2, %v533_v31  ;;  %v1546_v2 = vld [vmem:[%s2204_s4] sm:$0xff] }
 0x916   :  { %v952_v12 = vperm.slane %v1546_v2, 7 }
 0x92f   :  { %v735_v0 = vpop.xlane.xlu1 %734 }
 0x930   :  { %v739_v3 = vmul.f32 %v735_v0, %v1878_v56 }
 0x932   :  { %v741_v6 = vadd.f32 1e-05, %v739_v3 }
 0x934   :  { %1522 = vrsqrt.f32 %v741_v6  ;;  %vm749_vm5 = vweird.f32 %v741_v6 }
 0x937   :  { %v738_v32 = vpop.xlane.xlu0 %737 }
 0x938   :  { %v740_v11 = vmul.f32 %v738_v32, %v1878_v56 }
 0x93a   :  { %v1523_v15 = vpop.eup %1522  ;;  %v742_v18 = vadd.f32 1e-05, %v740_v11 }
 0x93b   :  { %v744_v19 = vmul.f32 %v1523_v15, %v741_v6  ;;  %vm750_vm4 = vweird.f32 %v1523_v15  ;;  %v855_v6 = vpop.permute.xlu2 %854 }
 0x93c   :  { %1524 = vrsqrt.f32 %v742_v18  ;;  %vm751_vm7 = vmor %vm749_vm5, %vm750_vm4  ;;  %vm759_vm11 = vweird.f32 %v742_v18 }
 0x93d   :  { %v745_v47 = vmul.f32 %v1523_v15, %v744_v19 }
 0x93f   :  { %v746_v57 = vmul.f32 0.5, %v745_v47 }
 0x941   :  { %v747_v50 = vsub.f32 1.5, %v746_v57 }
 0x942   :  { %v1525_v38 = vpop.eup %1524 }
 0x943   :  { %v748_v44 = vmul.f32 %v1523_v15, %v747_v50  ;;  %v754_v51 = vmul.f32 %v1525_v38, %v742_v18  ;;  %vm760_vm10 = vweird.f32 %v1525_v38 }
 0x944   :  { %vm761_vm12 = vmor %vm759_vm11, %vm760_vm10 }
 0x945   :  { %v752_v53 = vsel %vm751_vm7, %v1523_v15, %v748_v44  ;;  %v755_v58 = vmul.f32 %v1525_v38, %v754_v51 }
 0x946   :  { %v763_v45 = vmul.f32 %v752_v53, %v1977_v63 }
 0x947   :  { %v756_v60 = vmul.f32 0.5, %v755_v58  ;;  %v1433_v46 = vpop.permute.xlu1 %1432 }
 0x948   :  { %v766_v13 = vmul.f32 %v765_v17, %v763_v45  ;;  %v1434_v14 = vunpack.i.l.bf16 %v1433_v46  ;;  %v1435_v23 = vunpack.i.h.bf16 %v1433_v46 }
 0x949   :  { %v757_v22 = vsub.f32 1.5, %v756_v60 }
 0x94a   :  { %845 = vmatpush.msrb.mxu0 %v1434_v14  ;;  %v2030_v63 = vadd.f32 %v768_v43, %v766_v13  ;;  %v823_v37 = vpop.permute.xlu0 %822 }
 0x94b   :  { %v758_v25 = vmul.f32 %v1525_v38, %v757_v22 }
 0x94c   :  { %1332 = vmatmul.msk.f32.vlgmr.msrb.gmra.mxu2 %vm145_vm0, %v2030_v63  ;;  %846 = vmatpush.msrb.mxu0 %v1435_v23 }
 0x94d   :  { %v762_v29 = vsel %vm761_vm12, %v1525_v38, %v758_v25  ;;  %1334 = vmatmul.msk.f32.vlgmr.msrb.gmra.mxu0 %vm145_vm0, %v535_v26 }
 0x94e   :  { %v764_v30 = vmul.f32 %v762_v29, %v1991_v24 }
 0x950   :  { %v767_v33 = vmul.f32 %v765_v17, %v764_v30 }
 0x952   :  { %v2037_v36 = vadd.f32 %v768_v43, %v767_v33  ;;  %v857_v9 = vpop.permute.xlu0 %856 }
 0x954   :  { %1333 = vmatmul.msk.f32.gmra.mxu2 %vm145_vm0, %v2037_v36 }
 0x955   :  { %1335 = vmatmul.msk.f32.gmra.mxu0 %vm145_vm0, %v536_v5 }
 0x9ca   :  { %v848_v54 = vpop.f32.mrf.mxu0 }
 0x9cb   :  { %v849_v41 = vadd.f32 %v848_v54, %v823_v37 }
 0x9cf   :  { %v799_v0 = vpop.f32.mrf.mxu2 }
 0x9d0   :  { %v800_v24 = vadd.f32 %v799_v0, %v2006_v55  ;;  %v1548_v0 = vld [vmem:[%s2203_s3 + $0x78] sm:$0xff] }
 0x9d2   :  { %v851_v40 = vpop.f32.mrf.mxu0 }
 0x9d3   :  { %v852_v42 = vadd.f32 %v851_v40, %v823_v37 }
 0x9d5   :  { %v1436_v1 = vpack.i.bf16 %v849_v41, %v852_v42  ;;  %1336 = vmatpush.xpose.msk.msrb.mxu3 %vm145_vm0, %v852_v42  ;;  %v1547_v42 = vld [vmem:[%s2203_s3 + $0x70] sm:$0xff] }
 0x9d7   :  { %v802_v3 = vpop.f32.mrf.mxu2 }
 0x9d8   :  { %v803_v4 = vadd.f32 %v802_v3, %v2006_v55  ;;  %v1550_v3 = vld [vmem:[%s2203_s3 + $0x58] sm:$0xff] }
 0x9d9   :  { %1337 = vmatpush.xpose.msk.msrb.mxu3 %vm145_vm0, %v849_v41 }
 0x9dc   :  { %1338 = vmatmul.msk.f32.vlgmr.msrb.gmra.mxu3 %vm145_vm0, %v800_v24  ;;  %v1549_v24 = vld [vmem:[%s2203_s3 + $0x50] sm:$0xff] }
 0x9e4   :  { %1339 = vmatmul.msk.f32.gmra.mxu3 %vm145_vm0, %v803_v4  ;;  %v1461_v4 = vpack.i.bf16 %v1549_v24, %v1550_v3 }
 0xa5f   :  { %v889_v7 = vpop.f32.mrf.mxu3 }
 0xa60   :  { %v890_v8 = vadd.f32 %v889_v7, %v855_v6  ;;  %v1551_v6 = vld [vmem:[%s2203_s3 + $0x40] sm:$0xff]  ;;  %v1552_v7 = vld [vmem:[%s2203_s3 + $0x48] sm:$0xff] }
 0xa62   :  { %v895_v32 = vsel %vm212_vm1, %v890_v8, -inf }
 0xa63   :  { %896 = vmax.xlane.f32.xlu1 %v895_v32  ;;  %v1049_v32 = vld [vmem:[%s2202_s2 + $0xb0] sm:$0xff] }
 0xa64   :  { %1069 = vmatpush.msra.mxu0 %v1049_v32 }
 0xa67   :  { %v892_v10 = vpop.f32.mrf.mxu3 }
 0xa68   :  { %v893_v11 = vadd.f32 %v892_v10, %v857_v9  ;;  %v1048_v9 = vld [vmem:[%s2202_s2 + $0x80] sm:$0xff]  ;;  %v1553_v10 = vld [vmem:[%s2203_s3 + $0x30] sm:$0xff] }
 0xa69   :  { %1070 = vmatpush.msra.mxu0 %v1048_v9 }
 0xa6a   :  { %v898_v15 = vsel %vm212_vm1, %v893_v11, -inf }
 0xa6b   :  { %899 = vmax.xlane.f32.xlu2 %v898_v15 }
 0xa83   :  { %1437 = vrot.lane.b32.xlu2 %v1436_v1, %s1591_s16  ;;  %v1451_v1 = vpack.i.bf16 %v1547_v42, %v1548_v0 }
 0xad6   :  { %v897_v18 = vpop.xlane.xlu1 %896 }
 0xad7   :  { %v901_v19 = vsub.f32 %v890_v8, %v897_v18  ;;  %v1466_v8 = vpack.i.bf16 %v1551_v6, %v1552_v7  ;;  %v1047_v18 = vld [vmem:[%s2202_s2 + $0x50] sm:$0xff] }
 0xad8   :  { %1071 = vmatpush.msra.mxu0 %v1047_v18 }
 0xad9   :  { %v903_v20 = vmul.f32 1.442695, %v901_v19  ;;  %v1046_v19 = vld [vmem:[%s2202_s2 + $0x20] sm:$0xff] }
 0xada   :  { %1072 = vmatpush.msra.mxu0 %v1046_v19 }
 0xadb   :  { %1526 = vpow2.f32 %v903_v20  ;;  %v1555_v20 = vld [vmem:[%s2203_s3 + $0x10] sm:$0xff] }
 0xade   :  { %v900_v55 = vpop.xlane.xlu2 %899 }
 0xadf   :  { %v902_v39 = vsub.f32 %v893_v11, %v900_v55  ;;  %v1554_v11 = vld [vmem:[%s2203_s3 + $0x38] sm:$0xff] }
 0xae0   :  { %v1471_v15 = vpack.i.bf16 %v1553_v10, %v1554_v11  ;;  %v1556_v55 = vld [vmem:[%s2203_s3 + $0x18] sm:$0xff] }
 0xae1   :  { %v1527_v47 = vpop.eup %1526  ;;  %v905_v57 = vmul.f32 1.442695, %v902_v39  ;;  %v1481_v39 = vpack.i.bf16 %v1555_v20, %v1556_v55 }
 0xae2   :  { %v907_v48 = vsel %vm212_vm1, %v1527_v47, 0.0 }
 0xae3   :  { %1528 = vpow2.f32 %v905_v57  ;;  %908 = vadd.xlane.f32.xlu0 %v907_v48  ;;  %v1558_v57 = vld [vmem:[%s2203_s3 + $0x68] sm:$0xff] }
 0xae6   :  { %v1438_v49 = vpop.permute.xlu2 %1437 }
 0xae7   :  { %v1439_v50 = vunpack.i.l.bf16 %v1438_v49  ;;  %v1440_v21 = vunpack.i.h.bf16 %v1438_v49 }
 0xae9   :  { %v1529_v38 = vpop.eup %1528  ;;  %943 = vmatpush.msra.mxu1 %v1439_v50 }
 0xaea   :  { %v910_v34 = vsel %vm212_vm1, %v1529_v38, 0.0 }
 0xaeb   :  { %944 = vmatpush.msra.mxu1 %v1440_v21  ;;  %911 = vadd.xlane.f32.xlu1 %v910_v34  ;;  %v1559_v21 = vld [vmem:[%s2203_s3] sm:$0xff]  ;;  %v1560_v34 = vld [vmem:[%s2203_s3 + $0x8] sm:$0xff] }
 0xaf7   :  { %1442 = vrot.lane.b32.xlu0 %v1975_v62, %s1592_s1 }
 0xb04   :  { %1447 = vrot.lane.b32.xlu1 %v1998_v27, %s1592_s1  ;;  %s1296_s1 = sshll.u32 %s1595_s29, 4  ;;  %s1297_s1 = int_to_ptr.vmem [resolvable:$true] %s1296_s1 }
 0xb56   :  { %v909_v44 = vpop.xlane.xlu0 %908 }
 0xb57   :  { %1530 = vrcp.f32 %v909_v44  ;;  %v1486_v44 = vpack.i.bf16 %v1559_v21, %v1560_v34  ;;  %v1082_v34 = vperm.slane %v1909_v16, 1 }
 0xb5d   :  { %v1531_v51 = vpop.eup %1530 }
 0xb5e   :  { %v915_v52 = vmul.f32 %v1531_v51, %v1527_v47  ;;  %v912_v17 = vpop.xlane.xlu1 %911  ;;  %v1557_v47 = vld [vmem:[%s2203_s3 + $0x60] sm:$0xff] }
 0xb5f   :  { %1532 = vrcp.f32 %v912_v17  ;;  %v1456_v48 = vpack.i.bf16 %v1557_v47, %v1558_v57  ;;  %v1561_v51 = vld [vmem:[%s2203_s3 + $0x20] sm:$0xff]  ;;  %v1050_v47 = vperm.slane %v1909_v16, 0 }
 0xb60   :  { %1340 = vmatmul.msk.f32.vlgmr.msra.gmra.mxu1 %vm212_vm1, %v915_v52  ;;  %v1562_v52 = vld [vmem:[%s2203_s3 + $0x28] sm:$0xff] }
 0xb61   :  { %v1476_v17 = vpack.i.bf16 %v1561_v51, %v1562_v52 }
 0xb65   :  { %v1533_v53 = vpop.eup %1532 }
 0xb66   :  { %v916_v58 = vmul.f32 %v1533_v53, %v1529_v38 }
 0xb68   :  { %1341 = vmatmul.msk.f32.gmra.mxu1 %vm212_vm1, %v916_v58 }
 0xb69   :  { %v1443_v45 = vpop.permute.xlu0 %1442 }
 0xb6a   :  { %v1445_v43 = vunpack.i.h.bf16 %v1443_v45  ;;  %v1444_v59 = vunpack.i.l.bf16 %v1443_v45 }
 0xb6c   :  { %983 = vmatpush.msra.mxu2 %v1444_v59 }
 0xb6e   :  { %984 = vmatpush.msra.mxu2 %v1445_v43 }
 0xb76   :  { %v1448_v60 = vpop.permute.xlu1 %1447 }
 0xb77   :  { %v1449_v62 = vunpack.i.l.bf16 %v1448_v60  ;;  %v1450_v46 = vunpack.i.h.bf16 %v1448_v60 }
 0xb79   :  { %985 = vmatpush.msra.mxu2 %v1449_v62 }
 0xb7b   :  { %986 = vmatpush.msra.mxu2 %v1450_v46 }
 0xbdd   :  { %v946_v27 = vpop.f32.mrf.mxu1 }
 0xbde   :  { %1342 = vmatmul.msk.f32.vlgmr.msra.gmra.mxu2 %vm145_vm0, %v946_v27 }
 0xbe5   :  { %v949_v61 = vpop.f32.mrf.mxu1 }
 0xbe6   :  { %1343 = vmatmul.msk.f32.gmra.mxu2 %vm145_vm0, %v949_v61 }
 0xc61   :  { %v988_v13 = vpop.f32.mrf.mxu2 }
 0xc62   :  { %v989_v14 = vadd.f32 %v988_v13, %v952_v12 }
 0xc64   :  { %v994_v22 = vadd.f32 %v989_v14, %v2030_v63 }
 0xc66   :  { %v996_v23 = vsel %vm145_vm0, %v994_v22, 0.0 }
 0xc67   :  { %997 = vadd.xlane.f32.xlu2 %v996_v23  ;;  %v1043_v23 = vperm.slane %v2018_v35, 4 }
 0xc69   :  { %v991_v25 = vpop.f32.mrf.mxu2 }
 0xc6a   :  { %v992_v26 = vadd.f32 %v991_v25, %v952_v12  ;;  %v1040_v12 = vperm.slane %v2018_v35, 3 }
 0xc6c   :  { %v995_v28 = vadd.f32 %v992_v26, %v2037_v36 }
 0xc6e   :  { %v999_v29 = vsel %vm145_vm0, %v995_v28, 0.0 }
 0xc6f   :  { %1000 = vadd.xlane.f32.xlu0 %v999_v29 }
 0xc83   :  { %1452 = vrot.lane.b32.xlu0 %v1451_v1, %s1591_s16 }
 0xc8b   :  { %1467 = vrot.lane.b32.xlu0 %v1466_v8, %s1591_s16 }
 0xc93   :  { %1472 = vrot.lane.b32.xlu0 %v1471_v15, %s1591_s16 }
 0xc9b   :  { %1487 = vrot.lane.b32.xlu0 %v1486_v44, %s1591_s16 }
 0xcda   :  { %v998_v30 = vpop.xlane.xlu2 %997 }
 0xcdb   :  { %v1002_v31 = vmul.f32 %v998_v30, %v1878_v56 }
 0xcdd   :  { %v2069_v33 = vsub.f32 %v994_v22, %v1002_v31 }
 0xcdf   :  { %v1006_v5 = vmul.f32 %v2069_v33, %v2069_v33 }
 0xce1   :  { %v1008_v63 = vsel %vm145_vm0, %v1006_v5, 0.0 }
 0xce2   :  { %v1001_v54 = vpop.xlane.xlu0 %1000  ;;  %1009 = vadd.xlane.f32.xlu1 %v1008_v63 }
 0xce3   :  { %v1003_v37 = vmul.f32 %v1001_v54, %v1878_v56 }
 0xce5   :  { %v2075_v40 = vsub.f32 %v995_v28, %v1003_v37 }
 0xce7   :  { %v1007_v36 = vmul.f32 %v2075_v40, %v2075_v40 }
 0xce9   :  { %v1011_v41 = vsel %vm145_vm0, %v1007_v36, 0.0 }
 0xcea   :  { %1012 = vadd.xlane.f32.xlu2 %v1011_v41 }
 0xcfb   :  { %1462 = vrot.lane.b32.xlu1 %v1461_v4, %s1591_s16 }
 0xd02   :  { %1457 = vrot.lane.b32.xlu2 %v1456_v48, %s1591_s16 }
 0xd03   :  { %1482 = vrot.lane.b32.xlu1 %v1481_v39, %s1591_s16 }
 0xd0a   :  { %1477 = vrot.lane.b32.xlu2 %v1476_v17, %s1591_s16 }
 0xd55   :  { %v1010_v49 = vpop.xlane.xlu1 %1009 }
 0xd56   :  { %v1014_v50 = vmul.f32 %v1010_v49, %v1878_v56 }
 0xd58   :  { %v1016_v38 = vadd.f32 1e-05, %v1014_v50 }
 0xd5a   :  { %1534 = vrsqrt.f32 %v1016_v38  ;;  %vm1024_vm13 = vweird.f32 %v1016_v38 }
 0xd5d   :  { %v1013_v53 = vpop.xlane.xlu2 %1012 }
 0xd5e   :  { %v1015_v58 = vmul.f32 %v1013_v53, %v1878_v56 }
 0xd60   :  { %v1535_v45 = vpop.eup %1534  ;;  %v1017_v43 = vadd.f32 1e-05, %v1015_v58 }
 0xd61   :  { %v1019_v59 = vmul.f32 %v1535_v45, %v1016_v38  ;;  %vm1025_vm1 = vweird.f32 %v1535_v45 }
 0xd62   :  { %1536 = vrsqrt.f32 %v1017_v43  ;;  %vm1026_vm14 = vmor %vm1024_vm13, %vm1025_vm1  ;;  %vm1034_vm2 = vweird.f32 %v1017_v43 }
 0xd63   :  { %v1020_v60 = vmul.f32 %v1535_v45, %v1019_v59 }
 0xd65   :  { %v1021_v62 = vmul.f32 0.5, %v1020_v60  ;;  %v1458_v41 = vpop.permute.xlu2 %1457 }
 0xd66   :  { %v1460_v42 = vunpack.i.h.bf16 %v1458_v41  ;;  %v1459_v0 = vunpack.i.l.bf16 %v1458_v41 }
 0xd67   :  { %v1022_v46 = vsub.f32 1.5, %v1021_v62 }
 0xd68   :  { %v1537_v27 = vpop.eup %1536 }
 0xd69   :  { %v1023_v61 = vmul.f32 %v1535_v45, %v1022_v46  ;;  %v1029_v2 = vmul.f32 %v1537_v27, %v1017_v43  ;;  %vm1035_vm15 = vweird.f32 %v1537_v27 }
 0xd6a   :  { %vm1036_vm3 = vmor %vm1034_vm2, %vm1035_vm15 }
 0xd6b   :  { %v1027_v13 = vsel %vm1026_vm14, %v1535_v45, %v1023_v61  ;;  %v1030_v14 = vmul.f32 %v1537_v27, %v1029_v2 }
 0xd6c   :  { %v1038_v22 = vmul.f32 %v1027_v13, %v2069_v33  ;;  %v1453_v33 = vpop.permute.xlu0 %1452 }
 0xd6d   :  { %v1031_v25 = vmul.f32 0.5, %v1030_v14  ;;  %v1455_v37 = vunpack.i.h.bf16 %v1453_v33  ;;  %v1454_v36 = vunpack.i.l.bf16 %v1453_v33  ;;  %v1463_v1 = vpop.permute.xlu1 %1462  ;;  %v1478_v8 = vpop.permute.xlu2 %1477 }
 0xd6e   :  { %v1041_v26 = vmul.f32 %v1040_v12, %v1038_v22  ;;  %v1465_v24 = vunpack.i.h.bf16 %v1463_v1  ;;  %v1464_v3 = vunpack.i.l.bf16 %v1463_v1  ;;  %v1479_v10 = vunpack.i.l.bf16 %v1478_v8 }
 0xd6f   :  { %v1032_v28 = vsub.f32 1.5, %v1031_v25  ;;  %1131 = vmatpush.msra.mxu3 %v1454_v36  ;;  %v1480_v11 = vunpack.i.h.bf16 %v1478_v8  ;;  %v1200_v36 = vperm.slane %v2018_v35, 5  ;;  %v1203_v1 = vperm.slane %v2018_v35, 6 }
 0xd70   :  { %v1044_v29 = vadd.f32 %v1043_v23, %v1041_v26 }
 0xd71   :  { %v1033_v30 = vmul.f32 %v1537_v27, %v1032_v28  ;;  %1132 = vmatpush.msra.mxu3 %v1455_v37 }
 0xd72   :  { %1344 = vmatmul.msk.f32.vlgmr.msra.gmra.mxu0 %vm145_vm0, %v1044_v29 }
 0xd73   :  { %v1037_v31 = vsel %vm1036_vm3, %v1537_v27, %v1033_v30  ;;  %1133 = vmatpush.msra.mxu3 %v1459_v0 }
 0xd74   :  { %v1039_v5 = vmul.f32 %v1037_v31, %v2075_v40  ;;  %v1468_v4 = vpop.permute.xlu0 %1467 }
 0xd75   :  { %1134 = vmatpush.msra.mxu3 %v1460_v42  ;;  %v1470_v40 = vunpack.i.h.bf16 %v1468_v4  ;;  %v1469_v6 = vunpack.i.l.bf16 %v1468_v4  ;;  %v1483_v15 = vpop.permute.xlu1 %1482 }
 0xd76   :  { %v1042_v63 = vmul.f32 %v1040_v12, %v1039_v5  ;;  %v1484_v18 = vunpack.i.l.bf16 %v1483_v15  ;;  %v1485_v19 = vunpack.i.h.bf16 %v1483_v15 }
 0xd77   :  { %1135 = vmatpush.msra.mxu3 %v1464_v3 }
 0xd78   :  { %v1045_v54 = vadd.f32 %v1043_v23, %v1042_v63 }
 0xd79   :  { %1136 = vmatpush.msra.mxu3 %v1465_v24 }
 0xd7a   :  { %1345 = vmatmul.msk.f32.gmra.mxu0 %vm145_vm0, %v1045_v54 }
 0xd7b   :  { %1137 = vmatpush.msra.mxu3 %v1469_v6 }
 0xd7c   :  { %v1473_v7 = vpop.permute.xlu0 %1472 }
 0xd7d   :  { %1138 = vmatpush.msra.mxu3 %v1470_v40  ;;  %v1475_v32 = vunpack.i.h.bf16 %v1473_v7  ;;  %v1474_v9 = vunpack.i.l.bf16 %v1473_v7 }
 0xd7f   :  { %1139 = vmatpush.msra.mxu3 %v1474_v9 }
 0xd81   :  { %1140 = vmatpush.msra.mxu3 %v1475_v32 }
 0xd83   :  { %1141 = vmatpush.msra.mxu3 %v1479_v10 }
 0xd84   :  { %v1488_v20 = vpop.permute.xlu0 %1487 }
 0xd85   :  { %1142 = vmatpush.msra.mxu3 %v1480_v11  ;;  %v1490_v55 = vunpack.i.h.bf16 %v1488_v20  ;;  %v1489_v39 = vunpack.i.l.bf16 %v1488_v20 }
 0xd87   :  { %1143 = vmatpush.msra.mxu3 %v1484_v18 }
 0xd89   :  { %1144 = vmatpush.msra.mxu3 %v1485_v19 }
 0xd8b   :  { %1145 = vmatpush.msra.mxu3 %v1489_v39 }
 0xd8d   :  { %1146 = vmatpush.msra.mxu3 %v1490_v55 }
 0xdef   :  { %v1074_v57 = vpop.f32.mrf.mxu0 }
 0xdf0   :  { %v1075_v48 = vadd.f32 %v1074_v57, %v1050_v47 }
 0xdf2   :  { %v1080_v49 = vmax.f32 %v1075_v48, 0.0 }
 0xdf4   :  { %1147 = vmatmul.f32.vlgmr.msra.gmra.mxu3 %v1080_v49 }
 0xdf7   :  { %v1077_v50 = vpop.f32.mrf.mxu0 }
 0xdf8   :  { %v1078_v38 = vadd.f32 %v1077_v50, %v1050_v47  ;;  %v1259_v50 = vld [vmem:[%s2202_s2 + $0xb8] sm:$0xff] }
 0xdf9   :  { %1279 = vmatpush.msrb.mxu1 %v1259_v50 }
 0xdfa   :  { %v1081_v21 = vmax.f32 %v1078_v38, 0.0  ;;  %v1258_v38 = vld [vmem:[%s2202_s2 + $0x88] sm:$0xff] }
 0xdfb   :  { %1280 = vmatpush.msrb.mxu1 %v1258_v38 }
 0xdfc   :  { %1150 = vmatmul.f32.gmra.mxu3 %v1081_v21  ;;  %v1257_v21 = vld [vmem:[%s2202_s2 + $0x58] sm:$0xff] }
 0xdfd   :  { %1281 = vmatpush.msrb.mxu1 %v1257_v21 }
 0xe77   :  { %v1148_v44 = vpop.f32.mrf.mxu3 }
 0xe78   :  { %v1149_v51 = vadd.f32 %v1148_v44, %v1082_v34 }
 0xe7a   :  { %v1154_v52 = vadd.f32 %v1149_v51, %v1044_v29 }
 0xe7c   :  { %v1156_v17 = vsel %vm145_vm0, %v1154_v52, 0.0 }
 0xe7d   :  { %1157 = vadd.xlane.f32.xlu2 %v1156_v17 }
 0xe7f   :  { %v1151_v53 = vpop.f32.mrf.mxu3 }
 0xe80   :  { %v1152_v58 = vadd.f32 %v1151_v53, %v1082_v34  ;;  %v1256_v34 = vld [vmem:[%s2202_s2 + $0x28] sm:$0xff] }
 0xe81   :  { %1282 = vmatpush.msrb.mxu1 %v1256_v34 }
 0xe82   :  { %v1155_v45 = vadd.f32 %v1152_v58, %v1045_v54 }
 0xe84   :  { %v1159_v43 = vsel %vm145_vm0, %v1155_v45, 0.0 }
 0xe85   :  { %1160 = vadd.xlane.f32.xlu1 %v1159_v43 }
 0xef0   :  { %v1158_v59 = vpop.xlane.xlu2 %1157 }
 0xef1   :  { %v1162_v60 = vmul.f32 %v1158_v59, %v1878_v56 }
 0xef3   :  { %v1164_v62 = vsub.f32 %v1154_v52, %v1162_v60 }
 0xef5   :  { %v1166_v46 = vmul.f32 %v1164_v62, %v1164_v62 }
 0xef7   :  { %v1168_v27 = vsel %vm145_vm0, %v1166_v46, 0.0 }
 0xef8   :  { %v1161_v16 = vpop.xlane.xlu1 %1160  ;;  %1169 = vadd.xlane.f32.xlu0 %v1168_v27 }
 0xef9   :  { %v1163_v61 = vmul.f32 %v1161_v16, %v1878_v56 }
 0xefb   :  { %v1165_v2 = vsub.f32 %v1155_v45, %v1163_v61  ;;  %v1250_v61 = vperm.slane %v2018_v35, 7 }
 0xefd   :  { %v1167_v12 = vmul.f32 %v1165_v2, %v1165_v2 }
 0xeff   :  { %v1171_v13 = vsel %vm145_vm0, %v1167_v12, 0.0 }
 0xf00   :  { %1172 = vadd.xlane.f32.xlu2 %v1171_v13 }
 0xf6b   :  { %v1170_v14 = vpop.xlane.xlu0 %1169 }
 0xf6c   :  { %v1174_v22 = vmul.f32 %v1170_v14, %v1878_v56 }
 0xf6e   :  { %v1176_v23 = vadd.f32 1e-05, %v1174_v22 }
 0xf70   :  { %1538 = vrsqrt.f32 %v1176_v23  ;;  %vm1184_vm5 = vweird.f32 %v1176_v23 }
 0xf73   :  { %v1173_v25 = vpop.xlane.xlu2 %1172 }
 0xf74   :  { %v1175_v26 = vmul.f32 %v1173_v25, %v1878_v56 }
 0xf76   :  { %v1539_v28 = vpop.eup %1538  ;;  %v1177_v29 = vadd.f32 1e-05, %v1175_v26 }
 0xf77   :  { %v1179_v30 = vmul.f32 %v1539_v28, %v1176_v23  ;;  %vm1185_vm4 = vweird.f32 %v1539_v28 }
 0xf78   :  { %1540 = vrsqrt.f32 %v1177_v29  ;;  %vm1186_vm6 = vmor %vm1184_vm5, %vm1185_vm4  ;;  %vm1194_vm8 = vweird.f32 %v1177_v29 }
 0xf79   :  { %v1180_v31 = vmul.f32 %v1539_v28, %v1179_v30 }
 0xf7b   :  { %v1181_v5 = vmul.f32 0.5, %v1180_v31  ;;  %v1563_v31 = vld [vmem:[%s2204_s4 + $0x8] sm:$0xff] }
 0xf7d   :  { %v1182_v63 = vsub.f32 1.5, %v1181_v5  ;;  %v1260_v5 = vperm.slane %v1563_v31, 2 }
 0xf7e   :  { %v1541_v54 = vpop.eup %1540 }
 0xf7f   :  { %v1183_v33 = vmul.f32 %v1539_v28, %v1182_v63  ;;  %v1189_v37 = vmul.f32 %v1541_v54, %v1177_v29  ;;  %vm1195_vm7 = vweird.f32 %v1541_v54 }
 0xf80   :  { %vm1196_vm9 = vmor %vm1194_vm8, %vm1195_vm7 }
 0xf81   :  { %v1190_v41 = vmul.f32 %v1541_v54, %v1189_v37  ;;  %v1187_v42 = vsel %vm1186_vm6, %v1539_v28, %v1183_v33 }
 0xf82   :  { %v1198_v0 = vmul.f32 %v1187_v42, %v1164_v62 }
 0xf83   :  { %v1191_v24 = vmul.f32 0.5, %v1190_v41 }
 0xf84   :  { %v1201_v3 = vmul.f32 %v1200_v36, %v1198_v0 }
 0xf85   :  { %v1192_v4 = vsub.f32 1.5, %v1191_v24 }
 0xf86   :  { %v1204_v40 = vadd.f32 %v1203_v1, %v1201_v3 }
 0xf87   :  { %v1193_v6 = vmul.f32 %v1541_v54, %v1192_v4 }
 0xf88   :  { %v1206_v7 = vsel %vm145_vm0, %v1204_v40, 0.0 }
 0xf89   :  { %1207 = vadd.xlane.f32.xlu1 %v1206_v7  ;;  %v1197_v8 = vsel %vm1196_vm9, %v1541_v54, %v1193_v6 }
 0xf8a   :  { %v1199_v32 = vmul.f32 %v1197_v8, %v1165_v2 }
 0xf8c   :  { %v1202_v9 = vmul.f32 %v1200_v36, %v1199_v32 }
 0xf8e   :  { %v1205_v10 = vadd.f32 %v1203_v1, %v1202_v9 }
 0xf90   :  { %v1209_v11 = vsel %vm145_vm0, %v1205_v10, 0.0 }
 0xf91   :  { %1210 = vadd.xlane.f32.xlu0 %v1209_v11 }
 0xffc   :  { %v1208_v15 = vpop.xlane.xlu1 %1207 }
 0xffd   :  { %v1212_v18 = vmul.f32 %v1208_v15, %v1878_v56 }
 0xfff   :  { %v1214_v19 = vsub.f32 %v1204_v40, %v1212_v18 }
0x1001   :  { %v1216_v20 = vmul.f32 %v1214_v19, %v1214_v19 }
0x1003   :  { %v1218_v55 = vsel %vm145_vm0, %v1216_v20, 0.0 }
0x1004   :  { %1219 = vadd.xlane.f32.xlu2 %v1218_v55  ;;  %v1211_v39 = vpop.xlane.xlu0 %1210 }
0x1005   :  { %v1213_v47 = vmul.f32 %v1211_v39, %v1878_v56 }
0x1007   :  { %v1215_v57 = vsub.f32 %v1205_v10, %v1213_v47 }
0x1009   :  { %v1217_v48 = vmul.f32 %v1215_v57, %v1215_v57 }
0x100b   :  { %v1221_v49 = vsel %vm145_vm0, %v1217_v48, 0.0 }
0x100c   :  { %1222 = vadd.xlane.f32.xlu1 %v1221_v49 }
0x1077   :  { %v1220_v44 = vpop.xlane.xlu2 %1219 }
0x1078   :  { %v1224_v51 = vmul.f32 %v1220_v44, %v1878_v56 }
0x107a   :  { %v1226_v52 = vadd.f32 1e-05, %v1224_v51 }
0x107c   :  { %1542 = vrsqrt.f32 %v1226_v52  ;;  %vm1234_vm11 = vweird.f32 %v1226_v52 }
0x107f   :  { %v1223_v17 = vpop.xlane.xlu1 %1222 }
0x1080   :  { %v1225_v53 = vmul.f32 %v1223_v17, %v1878_v56  ;;  %v1491_v56 = vld [vmem:[%s2204_s4 + $0x18] ss:$0 sm:$0xff] }
0x1082   :  { %v1543_v58 = vpop.eup %1542  ;;  %v1227_v45 = vadd.f32 1e-05, %v1225_v53 }
0x1083   :  { %v1229_v43 = vmul.f32 %v1543_v58, %v1226_v52  ;;  %vm1235_vm10 = vweird.f32 %v1543_v58 }
0x1084   :  { %1544 = vrsqrt.f32 %v1227_v45  ;;  %vm1236_vm12 = vmor %vm1234_vm11, %vm1235_vm10  ;;  %vm1244_vm13 = vweird.f32 %v1227_v45 }
0x1085   :  { %v1230_v59 = vmul.f32 %v1543_v58, %v1229_v43 }
0x1087   :  { %v1231_v60 = vmul.f32 0.5, %v1230_v59 }
0x1089   :  { %v1232_v62 = vsub.f32 1.5, %v1231_v60 }
0x108a   :  { %v1545_v46 = vpop.eup %1544 }
0x108b   :  { %v1233_v27 = vmul.f32 %v1543_v58, %v1232_v62  ;;  %v1239_v16 = vmul.f32 %v1545_v46, %v1227_v45  ;;  %vm1245_vm1 = vweird.f32 %v1545_v46 }
0x108c   :  { %vm1246_vm14 = vmor %vm1244_vm13, %vm1245_vm1 }
0x108d   :  { %v1237_v2 = vsel %vm1236_vm12, %v1543_v58, %v1233_v27  ;;  %v1240_v12 = vmul.f32 %v1545_v46, %v1239_v16 }
0x108e   :  { %v1248_v13 = vmul.f32 %v1237_v2, %v1214_v19 }
0x108f   :  { %v1241_v14 = vmul.f32 0.5, %v1240_v12 }
0x1090   :  { %v1251_v22 = vmul.f32 %v1250_v61, %v1248_v13 }
0x1091   :  { %v1242_v23 = vsub.f32 1.5, %v1241_v14 }
0x1092   :  { %v1254_v25 = vadd.f32 %v1491_v56, %v1251_v22 }
0x1093   :  { %v1243_v26 = vmul.f32 %v1545_v46, %v1242_v23 }
0x1094   :  { %1346 = vmatmul.msk.f32.vlgmr.msrb.gmra.mxu1 %vm145_vm0, %v1254_v25 }
0x1095   :  { %v1247_v28 = vsel %vm1246_vm14, %v1545_v46, %v1243_v26 }
0x1096   :  { %v1249_v35 = vmul.f32 %v1247_v28, %v1215_v57 }
0x1098   :  { %v1252_v29 = vmul.f32 %v1250_v61, %v1249_v35 }
0x109a   :  { %v1255_v30 = vadd.f32 %v1491_v56, %v1252_v29 }
0x109c   :  { %1347 = vmatmul.msk.f32.gmra.mxu1 %vm145_vm0, %v1255_v30 }
0x1111   :  { %v1284_v63 = vpop.f32.mrf.mxu1 }
0x1112   :  { %v1285_v54 = vadd.f32 %v1284_v63, %v1260_v5 }
0x1114   :  { %1290 = vst [vmem:[#allocation2] sm:$0xff] %v1285_v54 }
0x1119   :  { %v1287_v33 = vpop.f32.mrf.mxu1 }
0x111a   :  { %v1288_v37 = vadd.f32 %v1287_v33, %v1260_v5 }
0x111c   :  { %1291 = vst [vmem:[#allocation2 + $0x8] sm:$0xff] %v1288_v37 }
0x111d   :  { %1304 = dma.vmem_to_hbm [thread:$0]  %s1297_s1, 256, %s1299_s0, [#allocation3], %s1596_s7, %s1596_s7, %s1597_s8  }
0x111e   :  { %1588 = dma.done.wait [#allocation3], 256  }
0x111f   :  { %1589 = vsyncadd [#allocation3], 4294967040 }
0x1120   :  { %1309 = vsyncpa [#allocation3], 1 }

</bundles_post_ra>
